<compile_context>
chip_gen: v5e
topology: v5e:2x2
jax: 0.10.0
libtpu: 0.0.40
codegen_flags: <defaults>
</compile_context>

<pallas_src>
import functools

import jax
import jax.numpy as jnp
from jax.experimental import pallas as pl
from jax.experimental.pallas import tpu as pltpu


CFG = dict(vocab=100, hidden=32, heads=4, layers=2, intermediate=64,
           max_pos=64, type_vocab=2, num_classes=3)
LOGITS_PAD = 128  # lane-dense padded width for the classifier output


# ------------------------------ fused kernel --------------------------------

def _bert_kernel(emb_ref, bias_ref,
                 emb_ln_g_ref, emb_ln_b_ref,
                 qkv_w_ref, qkv_b_ref, ao_w_ref, ao_b_ref,
                 ln1_g_ref, ln1_b_ref,
                 ff1_w_ref, ff1_b_ref, ff2_w_ref, ff2_b_ref,
                 ln2_g_ref, ln2_b_ref,
                 pooler_w_ref, pooler_b_ref, fc_w_ref, fc_b_ref,
                 logits_ref, *, num_heads, eps):
    S, H = emb_ref.shape                  # tokens of one batch element, hidden
    L = qkv_w_ref.shape[0]                # number of encoder layers (static)
    Dh = H // num_heads
    scale = 1.0 / (Dh ** 0.5)

    def layernorm(y, g, b):
        mu = jnp.mean(y, axis=-1, keepdims=True)
        yc = y - mu
        var = jnp.mean(yc * yc, axis=-1, keepdims=True)
        return yc * jax.lax.rsqrt(var + eps) * g + b

    def gelu(y):  # exact erf-GELU (HF BERT default hidden_act="gelu")
        return 0.5 * y * (1.0 + jax.lax.erf(y * (1.0 / jnp.sqrt(2.0))))

    bias = bias_ref[...]                                  # (1, S) additive mask
    # embedding LayerNorm; dropout p=0.1 is identity at inference
    x = layernorm(emb_ref[...], emb_ln_g_ref[...], emb_ln_b_ref[...])

    for l in range(L):                                    # static unroll over layers
        # ---- fused QKV projection: one MXU pass with N = 3H ----
        qkv = jnp.dot(x, qkv_w_ref[l],
                      preferred_element_type=jnp.float32) + qkv_b_ref[l]   # (S, 3H)
        ao_w = ao_w_ref[l]                                                 # (H, H)

        # ---- multi-head attention + output projection, all in-kernel ----
        # concat-then-project == sum over heads of (ctx_h @ ao_w[h*Dh:(h+1)*Dh, :])
        acc = None
        for h in range(num_heads):                        # static unroll over heads
            qh = qkv[:, h * Dh:(h + 1) * Dh]              # (S, Dh)
            kh = qkv[:, H + h * Dh:H + (h + 1) * Dh]      # (S, Dh)
            vh = qkv[:, 2 * H + h * Dh:2 * H + (h + 1) * Dh]
            s = jax.lax.dot_general(qh, kh, (((1,), (1,)), ((), ())),
                                    preferred_element_type=jnp.float32) * scale
            s = s + bias                                  # mask padded keys
            s = s - jnp.max(s, axis=-1, keepdims=True)
            p = jnp.exp(s)
            p = p * pl.reciprocal(jnp.sum(p, axis=-1, keepdims=True), approx=True)
            ctx = jnp.dot(p, vh, preferred_element_type=jnp.float32)      # (S, Dh)
            contrib = jnp.dot(ctx, ao_w[h * Dh:(h + 1) * Dh, :],
                              preferred_element_type=jnp.float32)         # (S, H)
            acc = contrib if acc is None else acc + contrib
        x = layernorm(acc + ao_b_ref[l] + x, ln1_g_ref[l], ln1_b_ref[l])

        # ---- feed-forward ----
        ff = gelu(jnp.dot(x, ff1_w_ref[l],
                          preferred_element_type=jnp.float32) + ff1_b_ref[l])
        ff = jnp.dot(ff, ff2_w_ref[l],
                     preferred_element_type=jnp.float32) + ff2_b_ref[l]
        x = layernorm(ff + x, ln2_g_ref[l], ln2_b_ref[l])

    # ---- pooler (tanh on [CLS]) + classifier; dropout is identity in eval ----
    cls = x[0:1, :]                                                        # (1, H)
    pooled = jnp.tanh(jnp.dot(cls, pooler_w_ref[...],
                              preferred_element_type=jnp.float32) + pooler_b_ref[...])
    logits = jnp.dot(pooled, fc_w_ref[...],
                     preferred_element_type=jnp.float32) + fc_b_ref[...]   # (1, 128)
    logits_ref[...] = logits.astype(logits_ref.dtype)


# ------------------------------- forward glue --------------------------------

def bert_classifier_forward(params, input_ids, attention_mask, cfg=CFG):
    B, S = input_ids.shape
    H, nH, L = cfg['hidden'], cfg['heads'], cfg['layers']
    I, C, CP = cfg['intermediate'], cfg['num_classes'], LOGITS_PAD

    # embedding gathers are plain-JAX glue; everything else runs in the kernel
    emb = (params['word_emb'][input_ids]
           + params['pos_emb'][:S][None, :, :]
           + params['type_emb'][0][None, None, :]).astype(jnp.float32)     # (B,S,H)

    # HF-style extended additive attention mask (0 for keep, -10000 for pad)
    bias = ((1.0 - attention_mask.astype(jnp.float32)) * -10000.0).reshape(B, 1, S)

    kernel = functools.partial(_bert_kernel, num_heads=nH, eps=1e-12)

    logits_pad = pl.pallas_call(
        kernel,
        out_shape=jax.ShapeDtypeStruct((B, 1, CP), jnp.float32),
        grid=(B,),
        in_specs=[
            pl.BlockSpec((None, S, H), lambda b: (b, 0, 0)),       # emb (per batch)
            pl.BlockSpec((None, 1, S), lambda b: (b, 0, 0)),       # additive mask
            pl.BlockSpec((1, H), lambda b: (0, 0)),                # emb LN gamma
            pl.BlockSpec((1, H), lambda b: (0, 0)),                # emb LN beta
            pl.BlockSpec((L, H, 3 * H), lambda b: (0, 0, 0)),      # fused QKV weight
            pl.BlockSpec((L, 1, 3 * H), lambda b: (0, 0, 0)),      # fused QKV bias
            pl.BlockSpec((L, H, H), lambda b: (0, 0, 0)),          # attn output W
            pl.BlockSpec((L, 1, H), lambda b: (0, 0, 0)),          # attn output b
            pl.BlockSpec((L, 1, H), lambda b: (0, 0, 0)),          # LN1 gamma
            pl.BlockSpec((L, 1, H), lambda b: (0, 0, 0)),          # LN1 beta
            pl.BlockSpec((L, H, I), lambda b: (0, 0, 0)),          # FFN1 W
            pl.BlockSpec((L, 1, I), lambda b: (0, 0, 0)),          # FFN1 b
            pl.BlockSpec((L, I, H), lambda b: (0, 0, 0)),          # FFN2 W
            pl.BlockSpec((L, 1, H), lambda b: (0, 0, 0)),          # FFN2 b
            pl.BlockSpec((L, 1, H), lambda b: (0, 0, 0)),          # LN2 gamma
            pl.BlockSpec((L, 1, H), lambda b: (0, 0, 0)),          # LN2 beta
            pl.BlockSpec((H, H), lambda b: (0, 0)),                # pooler W
            pl.BlockSpec((1, H), lambda b: (0, 0)),                # pooler b
            pl.BlockSpec((H, CP), lambda b: (0, 0)),               # fc W (lane-padded)
            pl.BlockSpec((1, CP), lambda b: (0, 0)),               # fc b (lane-padded)
        ],
        out_specs=pl.BlockSpec((None, 1, CP), lambda b: (b, 0, 0)),
        compiler_params=pltpu.CompilerParams(dimension_semantics=("parallel",)),
    )(emb, bias,
      params['emb_ln_g'], params['emb_ln_b'],
      params['qkv_w'], params['qkv_b'],
      params['ao_w'], params['ao_b'],
      params['ln1_g'], params['ln1_b'],
      params['ff1_w'], params['ff1_b'],
      params['ff2_w'], params['ff2_b'],
      params['ln2_g'], params['ln2_b'],
      params['pooler_w'], params['pooler_b'],
      params['fc_w_pad'], params['fc_b_pad'])

    return logits_pad.reshape(B, CP)[:, :C]     # slice away lane padding


# --------------------------- pure-JAX reference -------------------------------

def reference_forward(params, input_ids, attention_mask, cfg=CFG):
    B, S = input_ids.shape
    H, nH, L, C = cfg['hidden'], cfg['heads'], cfg['layers'], cfg['num_classes']
    Dh = H // nH
    eps = 1e-12

    def ln(y, g, b):
        mu = jnp.mean(y, axis=-1, keepdims=True)
        var = jnp.mean((y - mu) ** 2, axis=-1, keepdims=True)
        return (y - mu) / jnp.sqrt(var + eps) * g + b

    def gelu(y):
        return 0.5 * y * (1.0 + jax.lax.erf(y / jnp.sqrt(2.0)))

    x = (params['word_emb'][input_ids]
         + params['pos_emb'][:S][None, :, :]
         + params['type_emb'][0][None, None, :]).astype(jnp.float32)
    x = ln(x, params['emb_ln_g'][0], params['emb_ln_b'][0])
    bias = ((1.0 - attention_mask.astype(jnp.float32)) * -10000.0)[:, None, None, :]

    for l in range(L):
        qkv = x @ params['qkv_w'][l] + params['qkv_b'][l]
        q, k, v = jnp.split(qkv, 3, axis=-1)
        q = q.reshape(B, S, nH, Dh).transpose(0, 2, 1, 3)
        k = k.reshape(B, S, nH, Dh).transpose(0, 2, 1, 3)
        v = v.reshape(B, S, nH, Dh).transpose(0, 2, 1, 3)
        s = jnp.einsum('bhqd,bhkd->bhqk', q, k) / jnp.sqrt(Dh) + bias
        p = jax.nn.softmax(s, axis=-1)
        ctx = jnp.einsum('bhqk,bhkd->bhqd', p, v).transpose(0, 2, 1, 3).reshape(B, S, H)
        attn = ctx @ params['ao_w'][l] + params['ao_b'][l]
        x = ln(attn + x, params['ln1_g'][l], params['ln1_b'][l])
        ff = gelu(x @ params['ff1_w'][l] + params['ff1_b'][l])
        ff = ff @ params['ff2_w'][l] + params['ff2_b'][l]
        x = ln(ff + x, params['ln2_g'][l], params['ln2_b'][l])

    pooled = jnp.tanh(x[:, 0, :] @ params['pooler_w'] + params['pooler_b'][0])
    return pooled @ params['fc_w_pad'][:, :C] + params['fc_b_pad'][0, :C]


# ------------------------------- init params ---------------------------------

def init_params(key, cfg):
    H, I, L = cfg['hidden'], cfg['intermediate'], cfg['layers']
    C, CP = cfg['num_classes'], LOGITS_PAD
    ks = jax.random.split(key, 10)

    def w(k, *shape):
        return jax.random.normal(k, shape, jnp.float32) * 0.02

    fc_w = w(ks[0], H, C)
    fc_w_pad = jnp.zeros((H, CP), jnp.float32).at[:, :C].set(fc_w)

    return {
        'word_emb': w(ks[1], cfg['vocab'], H),
        'pos_emb': w(ks[2], cfg['max_pos'], H),
        'type_emb': w(ks[3], cfg['type_vocab'], H),
        'emb_ln_g': jnp.ones((1, H), jnp.float32),
        'emb_ln_b': jnp.zeros((1, H), jnp.float32),
        'qkv_w': w(ks[4], L, H, 3 * H),
        'qkv_b': jnp.zeros((L, 1, 3 * H), jnp.float32),
        'ao_w': w(ks[5], L, H, H),
        'ao_b': jnp.zeros((L, 1, H), jnp.float32),
        'ln1_g': jnp.ones((L, 1, H), jnp.float32),
        'ln1_b': jnp.zeros((L, 1, H), jnp.float32),
        'ff1_w': w(ks[6], L, H, I),
        'ff1_b': jnp.zeros((L, 1, I), jnp.float32),
        'ff2_w': w(ks[7], L, I, H),
        'ff2_b': jnp.zeros((L, 1, H), jnp.float32),
        'ln2_g': jnp.ones((L, 1, H), jnp.float32),
        'ln2_b': jnp.zeros((L, 1, H), jnp.float32),
        'pooler_w': w(ks[8], H, H),
        'pooler_b': jnp.zeros((1, H), jnp.float32),
        'fc_w_pad': fc_w_pad,
        'fc_b_pad': jnp.zeros((1, CP), jnp.float32),
    }


# ---------------------------------- main --------------------------------------

if __name__ == "__main__":
    key = jax.random.PRNGKey(0)
    k_params, k_ids = jax.random.split(key)

    B, S = 2, 8
    params = init_params(k_params, CFG)
    input_ids = jax.random.randint(k_ids, (B, S), 0, CFG['vocab'], dtype=jnp.int32)
    attention_mask = jnp.array([[1, 1, 1, 1, 1, 1, 1, 1],
                                [1, 1, 1, 1, 1, 0, 0, 0]], dtype=jnp.int32)

    forward = jax.jit(bert_classifier_forward)
    logits = jax.block_until_ready(forward(params, input_ids, attention_mask))
    assert logits.shape == (B, CFG['num_classes'])

    ref = reference_forward(params, input_ids, attention_mask)
    assert jnp.allclose(logits, ref, atol=2e-2, rtol=2e-2), (logits, ref)

    print("KERNEL_OK")
</pallas_src>

<mosaic_0001>
module attributes {stable_mosaic.version = 11 : i64} {
  func.func @_bert_kernel(%arg0: i32, %arg1: memref<1x8x32xf32, #tpu.memory_space<vmem>>, %arg2: memref<1x1x8xf32, #tpu.memory_space<vmem>>, %arg3: memref<1x32xf32, #tpu.memory_space<vmem>>, %arg4: memref<1x32xf32, #tpu.memory_space<vmem>>, %arg5: memref<2x32x96xf32, #tpu.memory_space<vmem>>, %arg6: memref<2x1x96xf32, #tpu.memory_space<vmem>>, %arg7: memref<2x32x32xf32, #tpu.memory_space<vmem>>, %arg8: memref<2x1x32xf32, #tpu.memory_space<vmem>>, %arg9: memref<2x1x32xf32, #tpu.memory_space<vmem>>, %arg10: memref<2x1x32xf32, #tpu.memory_space<vmem>>, %arg11: memref<2x32x64xf32, #tpu.memory_space<vmem>>, %arg12: memref<2x1x64xf32, #tpu.memory_space<vmem>>, %arg13: memref<2x64x32xf32, #tpu.memory_space<vmem>>, %arg14: memref<2x1x32xf32, #tpu.memory_space<vmem>>, %arg15: memref<2x1x32xf32, #tpu.memory_space<vmem>>, %arg16: memref<2x1x32xf32, #tpu.memory_space<vmem>>, %arg17: memref<32x32xf32, #tpu.memory_space<vmem>>, %arg18: memref<1x32xf32, #tpu.memory_space<vmem>>, %arg19: memref<32x128xf32, #tpu.memory_space<vmem>>, %arg20: memref<1x128xf32, #tpu.memory_space<vmem>>, %arg21: memref<1x1x128xf32, #tpu.memory_space<vmem>>) attributes {dimension_semantics = [#tpu.dimension_semantics<parallel>], iteration_bounds = array<i64: 2>, scalar_prefetch = 0 : i64, scratch_operands = 0 : i64, tpu.core_type = #tpu.core_type<tc>, window_params = [{transform_indices = @transform_0, window_bounds = array<i64: 1, 8, 32>}, {transform_indices = @transform_1, window_bounds = array<i64: 1, 1, 8>}, {pipeline_mode = #tpu.pipeline_mode<synchronous>, transform_indices = @transform_2, window_bounds = array<i64: 1, 32>}, {pipeline_mode = #tpu.pipeline_mode<synchronous>, transform_indices = @transform_3, window_bounds = array<i64: 1, 32>}, {pipeline_mode = #tpu.pipeline_mode<synchronous>, transform_indices = @transform_4, window_bounds = array<i64: 2, 32, 96>}, {pipeline_mode = #tpu.pipeline_mode<synchronous>, transform_indices = @transform_5, window_bounds = array<i64: 2, 1, 96>}, {pipeline_mode = #tpu.pipeline_mode<synchronous>, transform_indices = @transform_6, window_bounds = array<i64: 2, 32, 32>}, {pipeline_mode = #tpu.pipeline_mode<synchronous>, transform_indices = @transform_7, window_bounds = array<i64: 2, 1, 32>}, {pipeline_mode = #tpu.pipeline_mode<synchronous>, transform_indices = @transform_8, window_bounds = array<i64: 2, 1, 32>}, {pipeline_mode = #tpu.pipeline_mode<synchronous>, transform_indices = @transform_9, window_bounds = array<i64: 2, 1, 32>}, {pipeline_mode = #tpu.pipeline_mode<synchronous>, transform_indices = @transform_10, window_bounds = array<i64: 2, 32, 64>}, {pipeline_mode = #tpu.pipeline_mode<synchronous>, transform_indices = @transform_11, window_bounds = array<i64: 2, 1, 64>}, {pipeline_mode = #tpu.pipeline_mode<synchronous>, transform_indices = @transform_12, window_bounds = array<i64: 2, 64, 32>}, {pipeline_mode = #tpu.pipeline_mode<synchronous>, transform_indices = @transform_13, window_bounds = array<i64: 2, 1, 32>}, {pipeline_mode = #tpu.pipeline_mode<synchronous>, transform_indices = @transform_14, window_bounds = array<i64: 2, 1, 32>}, {pipeline_mode = #tpu.pipeline_mode<synchronous>, transform_indices = @transform_15, window_bounds = array<i64: 2, 1, 32>}, {pipeline_mode = #tpu.pipeline_mode<synchronous>, transform_indices = @transform_16, window_bounds = array<i64: 32, 32>}, {pipeline_mode = #tpu.pipeline_mode<synchronous>, transform_indices = @transform_17, window_bounds = array<i64: 1, 32>}, {pipeline_mode = #tpu.pipeline_mode<synchronous>, transform_indices = @transform_18, window_bounds = array<i64: 32, 128>}, {pipeline_mode = #tpu.pipeline_mode<synchronous>, transform_indices = @transform_19, window_bounds = array<i64: 1, 128>}, {transform_indices = @transform_20, window_bounds = array<i64: 1, 1, 128>}]} {
    %c0 = arith.constant 0 : index
    %c0_0 = arith.constant 0 : index
    %c0_1 = arith.constant 0 : index
    %0 = vector.load %arg2[%c0, %c0_0, %c0_1] : memref<1x1x8xf32, #tpu.memory_space<vmem>>, vector<1x1x8xf32>
    %1 = vector.shape_cast %0 : vector<1x1x8xf32> to vector<1x8xf32>
    %c0_2 = arith.constant 0 : index
    %c0_3 = arith.constant 0 : index
    %c0_4 = arith.constant 0 : index
    %2 = vector.load %arg1[%c0_2, %c0_3, %c0_4] : memref<1x8x32xf32, #tpu.memory_space<vmem>>, vector<1x8x32xf32>
    %3 = vector.shape_cast %2 : vector<1x8x32xf32> to vector<8x32xf32>
    %c0_5 = arith.constant 0 : index
    %c0_6 = arith.constant 0 : index
    %4 = vector.load %arg3[%c0_5, %c0_6] : memref<1x32xf32, #tpu.memory_space<vmem>>, vector<1x32xf32>
    %c0_7 = arith.constant 0 : index
    %c0_8 = arith.constant 0 : index
    %5 = vector.load %arg4[%c0_7, %c0_8] : memref<1x32xf32, #tpu.memory_space<vmem>>, vector<1x32xf32>
    %cst = arith.constant dense<0.000000e+00> : vector<8xf32>
    %6 = vector.multi_reduction <add>, %3, %cst [1] : vector<8x32xf32> to vector<8xf32>
    %7 = vector.shape_cast %6 : vector<8xf32> to vector<8x1xf32>
    %cst_9 = arith.constant 3.200000e+01 : f32
    %8 = vector.broadcast %cst_9 : f32 to vector<8x1xf32>
    %9 = arith.divf %7, %8 : vector<8x1xf32>
    %10 = vector.broadcast %9 : vector<8x1xf32> to vector<8x32xf32>
    %11 = arith.subf %3, %10 : vector<8x32xf32>
    %12 = arith.mulf %11, %11 : vector<8x32xf32>
    %cst_10 = arith.constant dense<0.000000e+00> : vector<8xf32>
    %13 = vector.multi_reduction <add>, %12, %cst_10 [1] : vector<8x32xf32> to vector<8xf32>
    %14 = vector.shape_cast %13 : vector<8xf32> to vector<8x1xf32>
    %cst_11 = arith.constant 3.200000e+01 : f32
    %15 = vector.broadcast %cst_11 : f32 to vector<8x1xf32>
    %16 = arith.divf %14, %15 : vector<8x1xf32>
    %cst_12 = arith.constant 9.99999996E-13 : f32
    %17 = vector.broadcast %cst_12 : f32 to vector<8x1xf32>
    %18 = arith.addf %16, %17 : vector<8x1xf32>
    %19 = math.rsqrt %18 : vector<8x1xf32>
    %20 = vector.broadcast %19 : vector<8x1xf32> to vector<8x32xf32>
    %21 = arith.mulf %11, %20 : vector<8x32xf32>
    %22 = vector.broadcast %4 : vector<1x32xf32> to vector<8x32xf32>
    %23 = arith.mulf %21, %22 : vector<8x32xf32>
    %24 = vector.broadcast %5 : vector<1x32xf32> to vector<8x32xf32>
    %25 = arith.addf %23, %24 : vector<8x32xf32>
    %c0_13 = arith.constant 0 : index
    %c0_14 = arith.constant 0 : index
    %c0_15 = arith.constant 0 : index
    %26 = vector.load %arg5[%c0_13, %c0_14, %c0_15] : memref<2x32x96xf32, #tpu.memory_space<vmem>>, vector<1x32x96xf32>
    %27 = vector.shape_cast %26 : vector<1x32x96xf32> to vector<32x96xf32>
    %cst_16 = arith.constant dense<0.000000e+00> : vector<8x96xf32>
    %28 = tpu.matmul %25, %27, %cst_16 {dimension_numbers = #tpu.dot_dimension_numbers<[1], [0], [0], [1], [0, 0, 1, 1], [], []>} : vector<8x32xf32>, vector<32x96xf32>, vector<8x96xf32> -> vector<8x96xf32>
    %c0_17 = arith.constant 0 : index
    %c0_18 = arith.constant 0 : index
    %c0_19 = arith.constant 0 : index
    %29 = vector.load %arg6[%c0_17, %c0_18, %c0_19] : memref<2x1x96xf32, #tpu.memory_space<vmem>>, vector<1x1x96xf32>
    %30 = vector.shape_cast %29 : vector<1x1x96xf32> to vector<1x96xf32>
    %31 = vector.broadcast %30 : vector<1x96xf32> to vector<8x96xf32>
    %32 = arith.addf %28, %31 : vector<8x96xf32>
    %c0_20 = arith.constant 0 : index
    %c0_21 = arith.constant 0 : index
    %c0_22 = arith.constant 0 : index
    %33 = vector.load %arg7[%c0_20, %c0_21, %c0_22] : memref<2x32x32xf32, #tpu.memory_space<vmem>>, vector<1x32x32xf32>
    %34 = vector.shape_cast %33 : vector<1x32x32xf32> to vector<32x32xf32>
    %35 = vector.extract_strided_slice %32 {offsets = [0, 0], sizes = [8, 8], strides = [1, 1]} : vector<8x96xf32> to vector<8x8xf32>
    %36 = vector.extract_strided_slice %32 {offsets = [0, 32], sizes = [8, 8], strides = [1, 1]} : vector<8x96xf32> to vector<8x8xf32>
    %37 = vector.extract_strided_slice %32 {offsets = [0, 64], sizes = [8, 8], strides = [1, 1]} : vector<8x96xf32> to vector<8x8xf32>
    %cst_23 = arith.constant dense<0.000000e+00> : vector<8x8xf32>
    %38 = tpu.matmul %35, %36, %cst_23 {dimension_numbers = #tpu.dot_dimension_numbers<[1], [1], [0], [0], [0, 0, 1, 0], [], []>} : vector<8x8xf32>, vector<8x8xf32>, vector<8x8xf32> -> vector<8x8xf32>
    %cst_24 = arith.constant 0.353553385 : f32
    %39 = vector.broadcast %cst_24 : f32 to vector<8x8xf32>
    %40 = arith.mulf %38, %39 : vector<8x8xf32>
    %41 = vector.broadcast %1 : vector<1x8xf32> to vector<8x8xf32>
    %42 = arith.addf %40, %41 : vector<8x8xf32>
    %cst_25 = arith.constant dense<0xFF800000> : vector<8xf32>
    %43 = vector.multi_reduction <maximumf>, %42, %cst_25 [1] : vector<8x8xf32> to vector<8xf32>
    %44 = vector.shape_cast %43 : vector<8xf32> to vector<8x1xf32>
    %45 = vector.broadcast %44 : vector<8x1xf32> to vector<8x8xf32>
    %46 = arith.subf %42, %45 : vector<8x8xf32>
    %47 = math.exp %46 : vector<8x8xf32>
    %cst_26 = arith.constant dense<0.000000e+00> : vector<8xf32>
    %48 = vector.multi_reduction <add>, %47, %cst_26 [1] : vector<8x8xf32> to vector<8xf32>
    %49 = vector.shape_cast %48 : vector<8xf32> to vector<8x1xf32>
    %50 = tpu.reciprocal %49 {approx = true} : vector<8x1xf32> -> vector<8x1xf32>
    %51 = vector.broadcast %50 : vector<8x1xf32> to vector<8x8xf32>
    %52 = arith.mulf %47, %51 : vector<8x8xf32>
    %cst_27 = arith.constant dense<0.000000e+00> : vector<8x8xf32>
    %53 = tpu.matmul %52, %37, %cst_27 {dimension_numbers = #tpu.dot_dimension_numbers<[1], [0], [0], [1], [0, 0, 1, 1], [], []>} : vector<8x8xf32>, vector<8x8xf32>, vector<8x8xf32> -> vector<8x8xf32>
    %54 = vector.extract_strided_slice %34 {offsets = [0, 0], sizes = [8, 32], strides = [1, 1]} : vector<32x32xf32> to vector<8x32xf32>
    %cst_28 = arith.constant dense<0.000000e+00> : vector<8x32xf32>
    %55 = tpu.matmul %53, %54, %cst_28 {dimension_numbers = #tpu.dot_dimension_numbers<[1], [0], [0], [1], [0, 0, 1, 1], [], []>} : vector<8x8xf32>, vector<8x32xf32>, vector<8x32xf32> -> vector<8x32xf32>
    %56 = vector.extract_strided_slice %32 {offsets = [0, 8], sizes = [8, 8], strides = [1, 1]} : vector<8x96xf32> to vector<8x8xf32>
    %57 = vector.extract_strided_slice %32 {offsets = [0, 40], sizes = [8, 8], strides = [1, 1]} : vector<8x96xf32> to vector<8x8xf32>
    %58 = vector.extract_strided_slice %32 {offsets = [0, 72], sizes = [8, 8], strides = [1, 1]} : vector<8x96xf32> to vector<8x8xf32>
    %cst_29 = arith.constant dense<0.000000e+00> : vector<8x8xf32>
    %59 = tpu.matmul %56, %57, %cst_29 {dimension_numbers = #tpu.dot_dimension_numbers<[1], [1], [0], [0], [0, 0, 1, 0], [], []>} : vector<8x8xf32>, vector<8x8xf32>, vector<8x8xf32> -> vector<8x8xf32>
    %cst_30 = arith.constant 0.353553385 : f32
    %60 = vector.broadcast %cst_30 : f32 to vector<8x8xf32>
    %61 = arith.mulf %59, %60 : vector<8x8xf32>
    %62 = vector.broadcast %1 : vector<1x8xf32> to vector<8x8xf32>
    %63 = arith.addf %61, %62 : vector<8x8xf32>
    %cst_31 = arith.constant dense<0xFF800000> : vector<8xf32>
    %64 = vector.multi_reduction <maximumf>, %63, %cst_31 [1] : vector<8x8xf32> to vector<8xf32>
    %65 = vector.shape_cast %64 : vector<8xf32> to vector<8x1xf32>
    %66 = vector.broadcast %65 : vector<8x1xf32> to vector<8x8xf32>
    %67 = arith.subf %63, %66 : vector<8x8xf32>
    %68 = math.exp %67 : vector<8x8xf32>
    %cst_32 = arith.constant dense<0.000000e+00> : vector<8xf32>
    %69 = vector.multi_reduction <add>, %68, %cst_32 [1] : vector<8x8xf32> to vector<8xf32>
    %70 = vector.shape_cast %69 : vector<8xf32> to vector<8x1xf32>
    %71 = tpu.reciprocal %70 {approx = true} : vector<8x1xf32> -> vector<8x1xf32>
    %72 = vector.broadcast %71 : vector<8x1xf32> to vector<8x8xf32>
    %73 = arith.mulf %68, %72 : vector<8x8xf32>
    %cst_33 = arith.constant dense<0.000000e+00> : vector<8x8xf32>
    %74 = tpu.matmul %73, %58, %cst_33 {dimension_numbers = #tpu.dot_dimension_numbers<[1], [0], [0], [1], [0, 0, 1, 1], [], []>} : vector<8x8xf32>, vector<8x8xf32>, vector<8x8xf32> -> vector<8x8xf32>
    %75 = vector.extract_strided_slice %34 {offsets = [8, 0], sizes = [8, 32], strides = [1, 1]} : vector<32x32xf32> to vector<8x32xf32>
    %cst_34 = arith.constant dense<0.000000e+00> : vector<8x32xf32>
    %76 = tpu.matmul %74, %75, %cst_34 {dimension_numbers = #tpu.dot_dimension_numbers<[1], [0], [0], [1], [0, 0, 1, 1], [], []>} : vector<8x8xf32>, vector<8x32xf32>, vector<8x32xf32> -> vector<8x32xf32>
    %77 = arith.addf %55, %76 : vector<8x32xf32>
    %78 = vector.extract_strided_slice %32 {offsets = [0, 16], sizes = [8, 8], strides = [1, 1]} : vector<8x96xf32> to vector<8x8xf32>
    %79 = vector.extract_strided_slice %32 {offsets = [0, 48], sizes = [8, 8], strides = [1, 1]} : vector<8x96xf32> to vector<8x8xf32>
    %80 = vector.extract_strided_slice %32 {offsets = [0, 80], sizes = [8, 8], strides = [1, 1]} : vector<8x96xf32> to vector<8x8xf32>
    %cst_35 = arith.constant dense<0.000000e+00> : vector<8x8xf32>
    %81 = tpu.matmul %78, %79, %cst_35 {dimension_numbers = #tpu.dot_dimension_numbers<[1], [1], [0], [0], [0, 0, 1, 0], [], []>} : vector<8x8xf32>, vector<8x8xf32>, vector<8x8xf32> -> vector<8x8xf32>
    %cst_36 = arith.constant 0.353553385 : f32
    %82 = vector.broadcast %cst_36 : f32 to vector<8x8xf32>
    %83 = arith.mulf %81, %82 : vector<8x8xf32>
    %84 = vector.broadcast %1 : vector<1x8xf32> to vector<8x8xf32>
    %85 = arith.addf %83, %84 : vector<8x8xf32>
    %cst_37 = arith.constant dense<0xFF800000> : vector<8xf32>
    %86 = vector.multi_reduction <maximumf>, %85, %cst_37 [1] : vector<8x8xf32> to vector<8xf32>
    %87 = vector.shape_cast %86 : vector<8xf32> to vector<8x1xf32>
    %88 = vector.broadcast %87 : vector<8x1xf32> to vector<8x8xf32>
    %89 = arith.subf %85, %88 : vector<8x8xf32>
    %90 = math.exp %89 : vector<8x8xf32>
    %cst_38 = arith.constant dense<0.000000e+00> : vector<8xf32>
    %91 = vector.multi_reduction <add>, %90, %cst_38 [1] : vector<8x8xf32> to vector<8xf32>
    %92 = vector.shape_cast %91 : vector<8xf32> to vector<8x1xf32>
    %93 = tpu.reciprocal %92 {approx = true} : vector<8x1xf32> -> vector<8x1xf32>
    %94 = vector.broadcast %93 : vector<8x1xf32> to vector<8x8xf32>
    %95 = arith.mulf %90, %94 : vector<8x8xf32>
    %cst_39 = arith.constant dense<0.000000e+00> : vector<8x8xf32>
    %96 = tpu.matmul %95, %80, %cst_39 {dimension_numbers = #tpu.dot_dimension_numbers<[1], [0], [0], [1], [0, 0, 1, 1], [], []>} : vector<8x8xf32>, vector<8x8xf32>, vector<8x8xf32> -> vector<8x8xf32>
    %97 = vector.extract_strided_slice %34 {offsets = [16, 0], sizes = [8, 32], strides = [1, 1]} : vector<32x32xf32> to vector<8x32xf32>
    %cst_40 = arith.constant dense<0.000000e+00> : vector<8x32xf32>
    %98 = tpu.matmul %96, %97, %cst_40 {dimension_numbers = #tpu.dot_dimension_numbers<[1], [0], [0], [1], [0, 0, 1, 1], [], []>} : vector<8x8xf32>, vector<8x32xf32>, vector<8x32xf32> -> vector<8x32xf32>
    %99 = arith.addf %77, %98 : vector<8x32xf32>
    %100 = vector.extract_strided_slice %32 {offsets = [0, 24], sizes = [8, 8], strides = [1, 1]} : vector<8x96xf32> to vector<8x8xf32>
    %101 = vector.extract_strided_slice %32 {offsets = [0, 56], sizes = [8, 8], strides = [1, 1]} : vector<8x96xf32> to vector<8x8xf32>
    %102 = vector.extract_strided_slice %32 {offsets = [0, 88], sizes = [8, 8], strides = [1, 1]} : vector<8x96xf32> to vector<8x8xf32>
    %cst_41 = arith.constant dense<0.000000e+00> : vector<8x8xf32>
    %103 = tpu.matmul %100, %101, %cst_41 {dimension_numbers = #tpu.dot_dimension_numbers<[1], [1], [0], [0], [0, 0, 1, 0], [], []>} : vector<8x8xf32>, vector<8x8xf32>, vector<8x8xf32> -> vector<8x8xf32>
    %cst_42 = arith.constant 0.353553385 : f32
    %104 = vector.broadcast %cst_42 : f32 to vector<8x8xf32>
    %105 = arith.mulf %103, %104 : vector<8x8xf32>
    %106 = vector.broadcast %1 : vector<1x8xf32> to vector<8x8xf32>
    %107 = arith.addf %105, %106 : vector<8x8xf32>
    %cst_43 = arith.constant dense<0xFF800000> : vector<8xf32>
    %108 = vector.multi_reduction <maximumf>, %107, %cst_43 [1] : vector<8x8xf32> to vector<8xf32>
    %109 = vector.shape_cast %108 : vector<8xf32> to vector<8x1xf32>
    %110 = vector.broadcast %109 : vector<8x1xf32> to vector<8x8xf32>
    %111 = arith.subf %107, %110 : vector<8x8xf32>
    %112 = math.exp %111 : vector<8x8xf32>
    %cst_44 = arith.constant dense<0.000000e+00> : vector<8xf32>
    %113 = vector.multi_reduction <add>, %112, %cst_44 [1] : vector<8x8xf32> to vector<8xf32>
    %114 = vector.shape_cast %113 : vector<8xf32> to vector<8x1xf32>
    %115 = tpu.reciprocal %114 {approx = true} : vector<8x1xf32> -> vector<8x1xf32>
    %116 = vector.broadcast %115 : vector<8x1xf32> to vector<8x8xf32>
    %117 = arith.mulf %112, %116 : vector<8x8xf32>
    %cst_45 = arith.constant dense<0.000000e+00> : vector<8x8xf32>
    %118 = tpu.matmul %117, %102, %cst_45 {dimension_numbers = #tpu.dot_dimension_numbers<[1], [0], [0], [1], [0, 0, 1, 1], [], []>} : vector<8x8xf32>, vector<8x8xf32>, vector<8x8xf32> -> vector<8x8xf32>
    %119 = vector.extract_strided_slice %34 {offsets = [24, 0], sizes = [8, 32], strides = [1, 1]} : vector<32x32xf32> to vector<8x32xf32>
    %cst_46 = arith.constant dense<0.000000e+00> : vector<8x32xf32>
    %120 = tpu.matmul %118, %119, %cst_46 {dimension_numbers = #tpu.dot_dimension_numbers<[1], [0], [0], [1], [0, 0, 1, 1], [], []>} : vector<8x8xf32>, vector<8x32xf32>, vector<8x32xf32> -> vector<8x32xf32>
    %121 = arith.addf %99, %120 : vector<8x32xf32>
    %c0_47 = arith.constant 0 : index
    %c0_48 = arith.constant 0 : index
    %c0_49 = arith.constant 0 : index
    %122 = vector.load %arg8[%c0_47, %c0_48, %c0_49] : memref<2x1x32xf32, #tpu.memory_space<vmem>>, vector<1x1x32xf32>
    %123 = vector.shape_cast %122 : vector<1x1x32xf32> to vector<1x32xf32>
    %124 = vector.broadcast %123 : vector<1x32xf32> to vector<8x32xf32>
    %125 = arith.addf %121, %124 : vector<8x32xf32>
    %126 = arith.addf %125, %25 : vector<8x32xf32>
    %c0_50 = arith.constant 0 : index
    %c0_51 = arith.constant 0 : index
    %c0_52 = arith.constant 0 : index
    %127 = vector.load %arg9[%c0_50, %c0_51, %c0_52] : memref<2x1x32xf32, #tpu.memory_space<vmem>>, vector<1x1x32xf32>
    %128 = vector.shape_cast %127 : vector<1x1x32xf32> to vector<1x32xf32>
    %c0_53 = arith.constant 0 : index
    %c0_54 = arith.constant 0 : index
    %c0_55 = arith.constant 0 : index
    %129 = vector.load %arg10[%c0_53, %c0_54, %c0_55] : memref<2x1x32xf32, #tpu.memory_space<vmem>>, vector<1x1x32xf32>
    %130 = vector.shape_cast %129 : vector<1x1x32xf32> to vector<1x32xf32>
    %cst_56 = arith.constant dense<0.000000e+00> : vector<8xf32>
    %131 = vector.multi_reduction <add>, %126, %cst_56 [1] : vector<8x32xf32> to vector<8xf32>
    %132 = vector.shape_cast %131 : vector<8xf32> to vector<8x1xf32>
    %cst_57 = arith.constant 3.200000e+01 : f32
    %133 = vector.broadcast %cst_57 : f32 to vector<8x1xf32>
    %134 = arith.divf %132, %133 : vector<8x1xf32>
    %135 = vector.broadcast %134 : vector<8x1xf32> to vector<8x32xf32>
    %136 = arith.subf %126, %135 : vector<8x32xf32>
    %137 = arith.mulf %136, %136 : vector<8x32xf32>
    %cst_58 = arith.constant dense<0.000000e+00> : vector<8xf32>
    %138 = vector.multi_reduction <add>, %137, %cst_58 [1] : vector<8x32xf32> to vector<8xf32>
    %139 = vector.shape_cast %138 : vector<8xf32> to vector<8x1xf32>
    %cst_59 = arith.constant 3.200000e+01 : f32
    %140 = vector.broadcast %cst_59 : f32 to vector<8x1xf32>
    %141 = arith.divf %139, %140 : vector<8x1xf32>
    %cst_60 = arith.constant 9.99999996E-13 : f32
    %142 = vector.broadcast %cst_60 : f32 to vector<8x1xf32>
    %143 = arith.addf %141, %142 : vector<8x1xf32>
    %144 = math.rsqrt %143 : vector<8x1xf32>
    %145 = vector.broadcast %144 : vector<8x1xf32> to vector<8x32xf32>
    %146 = arith.mulf %136, %145 : vector<8x32xf32>
    %147 = vector.broadcast %128 : vector<1x32xf32> to vector<8x32xf32>
    %148 = arith.mulf %146, %147 : vector<8x32xf32>
    %149 = vector.broadcast %130 : vector<1x32xf32> to vector<8x32xf32>
    %150 = arith.addf %148, %149 : vector<8x32xf32>
    %c0_61 = arith.constant 0 : index
    %c0_62 = arith.constant 0 : index
    %c0_63 = arith.constant 0 : index
    %151 = vector.load %arg11[%c0_61, %c0_62, %c0_63] : memref<2x32x64xf32, #tpu.memory_space<vmem>>, vector<1x32x64xf32>
    %152 = vector.shape_cast %151 : vector<1x32x64xf32> to vector<32x64xf32>
    %cst_64 = arith.constant dense<0.000000e+00> : vector<8x64xf32>
    %153 = tpu.matmul %150, %152, %cst_64 {dimension_numbers = #tpu.dot_dimension_numbers<[1], [0], [0], [1], [0, 0, 1, 1], [], []>} : vector<8x32xf32>, vector<32x64xf32>, vector<8x64xf32> -> vector<8x64xf32>
    %c0_65 = arith.constant 0 : index
    %c0_66 = arith.constant 0 : index
    %c0_67 = arith.constant 0 : index
    %154 = vector.load %arg12[%c0_65, %c0_66, %c0_67] : memref<2x1x64xf32, #tpu.memory_space<vmem>>, vector<1x1x64xf32>
    %155 = vector.shape_cast %154 : vector<1x1x64xf32> to vector<1x64xf32>
    %156 = vector.broadcast %155 : vector<1x64xf32> to vector<8x64xf32>
    %157 = arith.addf %153, %156 : vector<8x64xf32>
    %cst_68 = arith.constant 5.000000e-01 : f32
    %158 = vector.broadcast %cst_68 : f32 to vector<8x64xf32>
    %159 = arith.mulf %158, %157 : vector<8x64xf32>
    %cst_69 = arith.constant 2.000000e+00 : f32
    %160 = math.sqrt %cst_69 : f32
    %cst_70 = arith.constant 1.000000e+00 : f32
    %161 = arith.divf %cst_70, %160 : f32
    %162 = vector.broadcast %161 : f32 to vector<8x64xf32>
    %163 = arith.mulf %157, %162 : vector<8x64xf32>
    %164 = math.erf %163 : vector<8x64xf32>
    %cst_71 = arith.constant 1.000000e+00 : f32
    %165 = vector.broadcast %cst_71 : f32 to vector<8x64xf32>
    %166 = arith.addf %165, %164 : vector<8x64xf32>
    %167 = arith.mulf %159, %166 : vector<8x64xf32>
    %c0_72 = arith.constant 0 : index
    %c0_73 = arith.constant 0 : index
    %c0_74 = arith.constant 0 : index
    %168 = vector.load %arg13[%c0_72, %c0_73, %c0_74] : memref<2x64x32xf32, #tpu.memory_space<vmem>>, vector<1x64x32xf32>
    %169 = vector.shape_cast %168 : vector<1x64x32xf32> to vector<64x32xf32>
    %cst_75 = arith.constant dense<0.000000e+00> : vector<8x32xf32>
    %170 = tpu.matmul %167, %169, %cst_75 {dimension_numbers = #tpu.dot_dimension_numbers<[1], [0], [0], [1], [0, 0, 1, 1], [], []>} : vector<8x64xf32>, vector<64x32xf32>, vector<8x32xf32> -> vector<8x32xf32>
    %c0_76 = arith.constant 0 : index
    %c0_77 = arith.constant 0 : index
    %c0_78 = arith.constant 0 : index
    %171 = vector.load %arg14[%c0_76, %c0_77, %c0_78] : memref<2x1x32xf32, #tpu.memory_space<vmem>>, vector<1x1x32xf32>
    %172 = vector.shape_cast %171 : vector<1x1x32xf32> to vector<1x32xf32>
    %173 = vector.broadcast %172 : vector<1x32xf32> to vector<8x32xf32>
    %174 = arith.addf %170, %173 : vector<8x32xf32>
    %175 = arith.addf %174, %150 : vector<8x32xf32>
    %c0_79 = arith.constant 0 : index
    %c0_80 = arith.constant 0 : index
    %c0_81 = arith.constant 0 : index
    %176 = vector.load %arg15[%c0_79, %c0_80, %c0_81] : memref<2x1x32xf32, #tpu.memory_space<vmem>>, vector<1x1x32xf32>
    %177 = vector.shape_cast %176 : vector<1x1x32xf32> to vector<1x32xf32>
    %c0_82 = arith.constant 0 : index
    %c0_83 = arith.constant 0 : index
    %c0_84 = arith.constant 0 : index
    %178 = vector.load %arg16[%c0_82, %c0_83, %c0_84] : memref<2x1x32xf32, #tpu.memory_space<vmem>>, vector<1x1x32xf32>
    %179 = vector.shape_cast %178 : vector<1x1x32xf32> to vector<1x32xf32>
    %cst_85 = arith.constant dense<0.000000e+00> : vector<8xf32>
    %180 = vector.multi_reduction <add>, %175, %cst_85 [1] : vector<8x32xf32> to vector<8xf32>
    %181 = vector.shape_cast %180 : vector<8xf32> to vector<8x1xf32>
    %cst_86 = arith.constant 3.200000e+01 : f32
    %182 = vector.broadcast %cst_86 : f32 to vector<8x1xf32>
    %183 = arith.divf %181, %182 : vector<8x1xf32>
    %184 = vector.broadcast %183 : vector<8x1xf32> to vector<8x32xf32>
    %185 = arith.subf %175, %184 : vector<8x32xf32>
    %186 = arith.mulf %185, %185 : vector<8x32xf32>
    %cst_87 = arith.constant dense<0.000000e+00> : vector<8xf32>
    %187 = vector.multi_reduction <add>, %186, %cst_87 [1] : vector<8x32xf32> to vector<8xf32>
    %188 = vector.shape_cast %187 : vector<8xf32> to vector<8x1xf32>
    %cst_88 = arith.constant 3.200000e+01 : f32
    %189 = vector.broadcast %cst_88 : f32 to vector<8x1xf32>
    %190 = arith.divf %188, %189 : vector<8x1xf32>
    %cst_89 = arith.constant 9.99999996E-13 : f32
    %191 = vector.broadcast %cst_89 : f32 to vector<8x1xf32>
    %192 = arith.addf %190, %191 : vector<8x1xf32>
    %193 = math.rsqrt %192 : vector<8x1xf32>
    %194 = vector.broadcast %193 : vector<8x1xf32> to vector<8x32xf32>
    %195 = arith.mulf %185, %194 : vector<8x32xf32>
    %196 = vector.broadcast %177 : vector<1x32xf32> to vector<8x32xf32>
    %197 = arith.mulf %195, %196 : vector<8x32xf32>
    %198 = vector.broadcast %179 : vector<1x32xf32> to vector<8x32xf32>
    %199 = arith.addf %197, %198 : vector<8x32xf32>
    %c1 = arith.constant 1 : index
    %c0_90 = arith.constant 0 : index
    %c0_91 = arith.constant 0 : index
    %200 = vector.load %arg5[%c1, %c0_90, %c0_91] : memref<2x32x96xf32, #tpu.memory_space<vmem>>, vector<1x32x96xf32>
    %201 = vector.shape_cast %200 : vector<1x32x96xf32> to vector<32x96xf32>
    %cst_92 = arith.constant dense<0.000000e+00> : vector<8x96xf32>
    %202 = tpu.matmul %199, %201, %cst_92 {dimension_numbers = #tpu.dot_dimension_numbers<[1], [0], [0], [1], [0, 0, 1, 1], [], []>} : vector<8x32xf32>, vector<32x96xf32>, vector<8x96xf32> -> vector<8x96xf32>
    %c1_93 = arith.constant 1 : index
    %c0_94 = arith.constant 0 : index
    %c0_95 = arith.constant 0 : index
    %203 = vector.load %arg6[%c1_93, %c0_94, %c0_95] : memref<2x1x96xf32, #tpu.memory_space<vmem>>, vector<1x1x96xf32>
    %204 = vector.shape_cast %203 : vector<1x1x96xf32> to vector<1x96xf32>
    %205 = vector.broadcast %204 : vector<1x96xf32> to vector<8x96xf32>
    %206 = arith.addf %202, %205 : vector<8x96xf32>
    %c1_96 = arith.constant 1 : index
    %c0_97 = arith.constant 0 : index
    %c0_98 = arith.constant 0 : index
    %207 = vector.load %arg7[%c1_96, %c0_97, %c0_98] : memref<2x32x32xf32, #tpu.memory_space<vmem>>, vector<1x32x32xf32>
    %208 = vector.shape_cast %207 : vector<1x32x32xf32> to vector<32x32xf32>
    %209 = vector.extract_strided_slice %206 {offsets = [0, 0], sizes = [8, 8], strides = [1, 1]} : vector<8x96xf32> to vector<8x8xf32>
    %210 = vector.extract_strided_slice %206 {offsets = [0, 32], sizes = [8, 8], strides = [1, 1]} : vector<8x96xf32> to vector<8x8xf32>
    %211 = vector.extract_strided_slice %206 {offsets = [0, 64], sizes = [8, 8], strides = [1, 1]} : vector<8x96xf32> to vector<8x8xf32>
    %cst_99 = arith.constant dense<0.000000e+00> : vector<8x8xf32>
    %212 = tpu.matmul %209, %210, %cst_99 {dimension_numbers = #tpu.dot_dimension_numbers<[1], [1], [0], [0], [0, 0, 1, 0], [], []>} : vector<8x8xf32>, vector<8x8xf32>, vector<8x8xf32> -> vector<8x8xf32>
    %cst_100 = arith.constant 0.353553385 : f32
    %213 = vector.broadcast %cst_100 : f32 to vector<8x8xf32>
    %214 = arith.mulf %212, %213 : vector<8x8xf32>
    %215 = vector.broadcast %1 : vector<1x8xf32> to vector<8x8xf32>
    %216 = arith.addf %214, %215 : vector<8x8xf32>
    %cst_101 = arith.constant dense<0xFF800000> : vector<8xf32>
    %217 = vector.multi_reduction <maximumf>, %216, %cst_101 [1] : vector<8x8xf32> to vector<8xf32>
    %218 = vector.shape_cast %217 : vector<8xf32> to vector<8x1xf32>
    %219 = vector.broadcast %218 : vector<8x1xf32> to vector<8x8xf32>
    %220 = arith.subf %216, %219 : vector<8x8xf32>
    %221 = math.exp %220 : vector<8x8xf32>
    %cst_102 = arith.constant dense<0.000000e+00> : vector<8xf32>
    %222 = vector.multi_reduction <add>, %221, %cst_102 [1] : vector<8x8xf32> to vector<8xf32>
    %223 = vector.shape_cast %222 : vector<8xf32> to vector<8x1xf32>
    %224 = tpu.reciprocal %223 {approx = true} : vector<8x1xf32> -> vector<8x1xf32>
    %225 = vector.broadcast %224 : vector<8x1xf32> to vector<8x8xf32>
    %226 = arith.mulf %221, %225 : vector<8x8xf32>
    %cst_103 = arith.constant dense<0.000000e+00> : vector<8x8xf32>
    %227 = tpu.matmul %226, %211, %cst_103 {dimension_numbers = #tpu.dot_dimension_numbers<[1], [0], [0], [1], [0, 0, 1, 1], [], []>} : vector<8x8xf32>, vector<8x8xf32>, vector<8x8xf32> -> vector<8x8xf32>
    %228 = vector.extract_strided_slice %208 {offsets = [0, 0], sizes = [8, 32], strides = [1, 1]} : vector<32x32xf32> to vector<8x32xf32>
    %cst_104 = arith.constant dense<0.000000e+00> : vector<8x32xf32>
    %229 = tpu.matmul %227, %228, %cst_104 {dimension_numbers = #tpu.dot_dimension_numbers<[1], [0], [0], [1], [0, 0, 1, 1], [], []>} : vector<8x8xf32>, vector<8x32xf32>, vector<8x32xf32> -> vector<8x32xf32>
    %230 = vector.extract_strided_slice %206 {offsets = [0, 8], sizes = [8, 8], strides = [1, 1]} : vector<8x96xf32> to vector<8x8xf32>
    %231 = vector.extract_strided_slice %206 {offsets = [0, 40], sizes = [8, 8], strides = [1, 1]} : vector<8x96xf32> to vector<8x8xf32>
    %232 = vector.extract_strided_slice %206 {offsets = [0, 72], sizes = [8, 8], strides = [1, 1]} : vector<8x96xf32> to vector<8x8xf32>
    %cst_105 = arith.constant dense<0.000000e+00> : vector<8x8xf32>
    %233 = tpu.matmul %230, %231, %cst_105 {dimension_numbers = #tpu.dot_dimension_numbers<[1], [1], [0], [0], [0, 0, 1, 0], [], []>} : vector<8x8xf32>, vector<8x8xf32>, vector<8x8xf32> -> vector<8x8xf32>
    %cst_106 = arith.constant 0.353553385 : f32
    %234 = vector.broadcast %cst_106 : f32 to vector<8x8xf32>
    %235 = arith.mulf %233, %234 : vector<8x8xf32>
    %236 = vector.broadcast %1 : vector<1x8xf32> to vector<8x8xf32>
    %237 = arith.addf %235, %236 : vector<8x8xf32>
    %cst_107 = arith.constant dense<0xFF800000> : vector<8xf32>
    %238 = vector.multi_reduction <maximumf>, %237, %cst_107 [1] : vector<8x8xf32> to vector<8xf32>
    %239 = vector.shape_cast %238 : vector<8xf32> to vector<8x1xf32>
    %240 = vector.broadcast %239 : vector<8x1xf32> to vector<8x8xf32>
    %241 = arith.subf %237, %240 : vector<8x8xf32>
    %242 = math.exp %241 : vector<8x8xf32>
    %cst_108 = arith.constant dense<0.000000e+00> : vector<8xf32>
    %243 = vector.multi_reduction <add>, %242, %cst_108 [1] : vector<8x8xf32> to vector<8xf32>
    %244 = vector.shape_cast %243 : vector<8xf32> to vector<8x1xf32>
    %245 = tpu.reciprocal %244 {approx = true} : vector<8x1xf32> -> vector<8x1xf32>
    %246 = vector.broadcast %245 : vector<8x1xf32> to vector<8x8xf32>
    %247 = arith.mulf %242, %246 : vector<8x8xf32>
    %cst_109 = arith.constant dense<0.000000e+00> : vector<8x8xf32>
    %248 = tpu.matmul %247, %232, %cst_109 {dimension_numbers = #tpu.dot_dimension_numbers<[1], [0], [0], [1], [0, 0, 1, 1], [], []>} : vector<8x8xf32>, vector<8x8xf32>, vector<8x8xf32> -> vector<8x8xf32>
    %249 = vector.extract_strided_slice %208 {offsets = [8, 0], sizes = [8, 32], strides = [1, 1]} : vector<32x32xf32> to vector<8x32xf32>
    %cst_110 = arith.constant dense<0.000000e+00> : vector<8x32xf32>
    %250 = tpu.matmul %248, %249, %cst_110 {dimension_numbers = #tpu.dot_dimension_numbers<[1], [0], [0], [1], [0, 0, 1, 1], [], []>} : vector<8x8xf32>, vector<8x32xf32>, vector<8x32xf32> -> vector<8x32xf32>
    %251 = arith.addf %229, %250 : vector<8x32xf32>
    %252 = vector.extract_strided_slice %206 {offsets = [0, 16], sizes = [8, 8], strides = [1, 1]} : vector<8x96xf32> to vector<8x8xf32>
    %253 = vector.extract_strided_slice %206 {offsets = [0, 48], sizes = [8, 8], strides = [1, 1]} : vector<8x96xf32> to vector<8x8xf32>
    %254 = vector.extract_strided_slice %206 {offsets = [0, 80], sizes = [8, 8], strides = [1, 1]} : vector<8x96xf32> to vector<8x8xf32>
    %cst_111 = arith.constant dense<0.000000e+00> : vector<8x8xf32>
    %255 = tpu.matmul %252, %253, %cst_111 {dimension_numbers = #tpu.dot_dimension_numbers<[1], [1], [0], [0], [0, 0, 1, 0], [], []>} : vector<8x8xf32>, vector<8x8xf32>, vector<8x8xf32> -> vector<8x8xf32>
    %cst_112 = arith.constant 0.353553385 : f32
    %256 = vector.broadcast %cst_112 : f32 to vector<8x8xf32>
    %257 = arith.mulf %255, %256 : vector<8x8xf32>
    %258 = vector.broadcast %1 : vector<1x8xf32> to vector<8x8xf32>
    %259 = arith.addf %257, %258 : vector<8x8xf32>
    %cst_113 = arith.constant dense<0xFF800000> : vector<8xf32>
    %260 = vector.multi_reduction <maximumf>, %259, %cst_113 [1] : vector<8x8xf32> to vector<8xf32>
    %261 = vector.shape_cast %260 : vector<8xf32> to vector<8x1xf32>
    %262 = vector.broadcast %261 : vector<8x1xf32> to vector<8x8xf32>
    %263 = arith.subf %259, %262 : vector<8x8xf32>
    %264 = math.exp %263 : vector<8x8xf32>
    %cst_114 = arith.constant dense<0.000000e+00> : vector<8xf32>
    %265 = vector.multi_reduction <add>, %264, %cst_114 [1] : vector<8x8xf32> to vector<8xf32>
    %266 = vector.shape_cast %265 : vector<8xf32> to vector<8x1xf32>
    %267 = tpu.reciprocal %266 {approx = true} : vector<8x1xf32> -> vector<8x1xf32>
    %268 = vector.broadcast %267 : vector<8x1xf32> to vector<8x8xf32>
    %269 = arith.mulf %264, %268 : vector<8x8xf32>
    %cst_115 = arith.constant dense<0.000000e+00> : vector<8x8xf32>
    %270 = tpu.matmul %269, %254, %cst_115 {dimension_numbers = #tpu.dot_dimension_numbers<[1], [0], [0], [1], [0, 0, 1, 1], [], []>} : vector<8x8xf32>, vector<8x8xf32>, vector<8x8xf32> -> vector<8x8xf32>
    %271 = vector.extract_strided_slice %208 {offsets = [16, 0], sizes = [8, 32], strides = [1, 1]} : vector<32x32xf32> to vector<8x32xf32>
    %cst_116 = arith.constant dense<0.000000e+00> : vector<8x32xf32>
    %272 = tpu.matmul %270, %271, %cst_116 {dimension_numbers = #tpu.dot_dimension_numbers<[1], [0], [0], [1], [0, 0, 1, 1], [], []>} : vector<8x8xf32>, vector<8x32xf32>, vector<8x32xf32> -> vector<8x32xf32>
    %273 = arith.addf %251, %272 : vector<8x32xf32>
    %274 = vector.extract_strided_slice %206 {offsets = [0, 24], sizes = [8, 8], strides = [1, 1]} : vector<8x96xf32> to vector<8x8xf32>
    %275 = vector.extract_strided_slice %206 {offsets = [0, 56], sizes = [8, 8], strides = [1, 1]} : vector<8x96xf32> to vector<8x8xf32>
    %276 = vector.extract_strided_slice %206 {offsets = [0, 88], sizes = [8, 8], strides = [1, 1]} : vector<8x96xf32> to vector<8x8xf32>
    %cst_117 = arith.constant dense<0.000000e+00> : vector<8x8xf32>
    %277 = tpu.matmul %274, %275, %cst_117 {dimension_numbers = #tpu.dot_dimension_numbers<[1], [1], [0], [0], [0, 0, 1, 0], [], []>} : vector<8x8xf32>, vector<8x8xf32>, vector<8x8xf32> -> vector<8x8xf32>
    %cst_118 = arith.constant 0.353553385 : f32
    %278 = vector.broadcast %cst_118 : f32 to vector<8x8xf32>
    %279 = arith.mulf %277, %278 : vector<8x8xf32>
    %280 = vector.broadcast %1 : vector<1x8xf32> to vector<8x8xf32>
    %281 = arith.addf %279, %280 : vector<8x8xf32>
    %cst_119 = arith.constant dense<0xFF800000> : vector<8xf32>
    %282 = vector.multi_reduction <maximumf>, %281, %cst_119 [1] : vector<8x8xf32> to vector<8xf32>
    %283 = vector.shape_cast %282 : vector<8xf32> to vector<8x1xf32>
    %284 = vector.broadcast %283 : vector<8x1xf32> to vector<8x8xf32>
    %285 = arith.subf %281, %284 : vector<8x8xf32>
    %286 = math.exp %285 : vector<8x8xf32>
    %cst_120 = arith.constant dense<0.000000e+00> : vector<8xf32>
    %287 = vector.multi_reduction <add>, %286, %cst_120 [1] : vector<8x8xf32> to vector<8xf32>
    %288 = vector.shape_cast %287 : vector<8xf32> to vector<8x1xf32>
    %289 = tpu.reciprocal %288 {approx = true} : vector<8x1xf32> -> vector<8x1xf32>
    %290 = vector.broadcast %289 : vector<8x1xf32> to vector<8x8xf32>
    %291 = arith.mulf %286, %290 : vector<8x8xf32>
    %cst_121 = arith.constant dense<0.000000e+00> : vector<8x8xf32>
    %292 = tpu.matmul %291, %276, %cst_121 {dimension_numbers = #tpu.dot_dimension_numbers<[1], [0], [0], [1], [0, 0, 1, 1], [], []>} : vector<8x8xf32>, vector<8x8xf32>, vector<8x8xf32> -> vector<8x8xf32>
    %293 = vector.extract_strided_slice %208 {offsets = [24, 0], sizes = [8, 32], strides = [1, 1]} : vector<32x32xf32> to vector<8x32xf32>
    %cst_122 = arith.constant dense<0.000000e+00> : vector<8x32xf32>
    %294 = tpu.matmul %292, %293, %cst_122 {dimension_numbers = #tpu.dot_dimension_numbers<[1], [0], [0], [1], [0, 0, 1, 1], [], []>} : vector<8x8xf32>, vector<8x32xf32>, vector<8x32xf32> -> vector<8x32xf32>
    %295 = arith.addf %273, %294 : vector<8x32xf32>
    %c1_123 = arith.constant 1 : index
    %c0_124 = arith.constant 0 : index
    %c0_125 = arith.constant 0 : index
    %296 = vector.load %arg8[%c1_123, %c0_124, %c0_125] : memref<2x1x32xf32, #tpu.memory_space<vmem>>, vector<1x1x32xf32>
    %297 = vector.shape_cast %296 : vector<1x1x32xf32> to vector<1x32xf32>
    %298 = vector.broadcast %297 : vector<1x32xf32> to vector<8x32xf32>
    %299 = arith.addf %295, %298 : vector<8x32xf32>
    %300 = arith.addf %299, %199 : vector<8x32xf32>
    %c1_126 = arith.constant 1 : index
    %c0_127 = arith.constant 0 : index
    %c0_128 = arith.constant 0 : index
    %301 = vector.load %arg9[%c1_126, %c0_127, %c0_128] : memref<2x1x32xf32, #tpu.memory_space<vmem>>, vector<1x1x32xf32>
    %302 = vector.shape_cast %301 : vector<1x1x32xf32> to vector<1x32xf32>
    %c1_129 = arith.constant 1 : index
    %c0_130 = arith.constant 0 : index
    %c0_131 = arith.constant 0 : index
    %303 = vector.load %arg10[%c1_129, %c0_130, %c0_131] : memref<2x1x32xf32, #tpu.memory_space<vmem>>, vector<1x1x32xf32>
    %304 = vector.shape_cast %303 : vector<1x1x32xf32> to vector<1x32xf32>
    %cst_132 = arith.constant dense<0.000000e+00> : vector<8xf32>
    %305 = vector.multi_reduction <add>, %300, %cst_132 [1] : vector<8x32xf32> to vector<8xf32>
    %306 = vector.shape_cast %305 : vector<8xf32> to vector<8x1xf32>
    %cst_133 = arith.constant 3.200000e+01 : f32
    %307 = vector.broadcast %cst_133 : f32 to vector<8x1xf32>
    %308 = arith.divf %306, %307 : vector<8x1xf32>
    %309 = vector.broadcast %308 : vector<8x1xf32> to vector<8x32xf32>
    %310 = arith.subf %300, %309 : vector<8x32xf32>
    %311 = arith.mulf %310, %310 : vector<8x32xf32>
    %cst_134 = arith.constant dense<0.000000e+00> : vector<8xf32>
    %312 = vector.multi_reduction <add>, %311, %cst_134 [1] : vector<8x32xf32> to vector<8xf32>
    %313 = vector.shape_cast %312 : vector<8xf32> to vector<8x1xf32>
    %cst_135 = arith.constant 3.200000e+01 : f32
    %314 = vector.broadcast %cst_135 : f32 to vector<8x1xf32>
    %315 = arith.divf %313, %314 : vector<8x1xf32>
    %cst_136 = arith.constant 9.99999996E-13 : f32
    %316 = vector.broadcast %cst_136 : f32 to vector<8x1xf32>
    %317 = arith.addf %315, %316 : vector<8x1xf32>
    %318 = math.rsqrt %317 : vector<8x1xf32>
    %319 = vector.broadcast %318 : vector<8x1xf32> to vector<8x32xf32>
    %320 = arith.mulf %310, %319 : vector<8x32xf32>
    %321 = vector.broadcast %302 : vector<1x32xf32> to vector<8x32xf32>
    %322 = arith.mulf %320, %321 : vector<8x32xf32>
    %323 = vector.broadcast %304 : vector<1x32xf32> to vector<8x32xf32>
    %324 = arith.addf %322, %323 : vector<8x32xf32>
    %c1_137 = arith.constant 1 : index
    %c0_138 = arith.constant 0 : index
    %c0_139 = arith.constant 0 : index
    %325 = vector.load %arg11[%c1_137, %c0_138, %c0_139] : memref<2x32x64xf32, #tpu.memory_space<vmem>>, vector<1x32x64xf32>
    %326 = vector.shape_cast %325 : vector<1x32x64xf32> to vector<32x64xf32>
    %cst_140 = arith.constant dense<0.000000e+00> : vector<8x64xf32>
    %327 = tpu.matmul %324, %326, %cst_140 {dimension_numbers = #tpu.dot_dimension_numbers<[1], [0], [0], [1], [0, 0, 1, 1], [], []>} : vector<8x32xf32>, vector<32x64xf32>, vector<8x64xf32> -> vector<8x64xf32>
    %c1_141 = arith.constant 1 : index
    %c0_142 = arith.constant 0 : index
    %c0_143 = arith.constant 0 : index
    %328 = vector.load %arg12[%c1_141, %c0_142, %c0_143] : memref<2x1x64xf32, #tpu.memory_space<vmem>>, vector<1x1x64xf32>
    %329 = vector.shape_cast %328 : vector<1x1x64xf32> to vector<1x64xf32>
    %330 = vector.broadcast %329 : vector<1x64xf32> to vector<8x64xf32>
    %331 = arith.addf %327, %330 : vector<8x64xf32>
    %cst_144 = arith.constant 5.000000e-01 : f32
    %332 = vector.broadcast %cst_144 : f32 to vector<8x64xf32>
    %333 = arith.mulf %332, %331 : vector<8x64xf32>
    %cst_145 = arith.constant 2.000000e+00 : f32
    %334 = math.sqrt %cst_145 : f32
    %cst_146 = arith.constant 1.000000e+00 : f32
    %335 = arith.divf %cst_146, %334 : f32
    %336 = vector.broadcast %335 : f32 to vector<8x64xf32>
    %337 = arith.mulf %331, %336 : vector<8x64xf32>
    %338 = math.erf %337 : vector<8x64xf32>
    %cst_147 = arith.constant 1.000000e+00 : f32
    %339 = vector.broadcast %cst_147 : f32 to vector<8x64xf32>
    %340 = arith.addf %339, %338 : vector<8x64xf32>
    %341 = arith.mulf %333, %340 : vector<8x64xf32>
    %c1_148 = arith.constant 1 : index
    %c0_149 = arith.constant 0 : index
    %c0_150 = arith.constant 0 : index
    %342 = vector.load %arg13[%c1_148, %c0_149, %c0_150] : memref<2x64x32xf32, #tpu.memory_space<vmem>>, vector<1x64x32xf32>
    %343 = vector.shape_cast %342 : vector<1x64x32xf32> to vector<64x32xf32>
    %cst_151 = arith.constant dense<0.000000e+00> : vector<8x32xf32>
    %344 = tpu.matmul %341, %343, %cst_151 {dimension_numbers = #tpu.dot_dimension_numbers<[1], [0], [0], [1], [0, 0, 1, 1], [], []>} : vector<8x64xf32>, vector<64x32xf32>, vector<8x32xf32> -> vector<8x32xf32>
    %c1_152 = arith.constant 1 : index
    %c0_153 = arith.constant 0 : index
    %c0_154 = arith.constant 0 : index
    %345 = vector.load %arg14[%c1_152, %c0_153, %c0_154] : memref<2x1x32xf32, #tpu.memory_space<vmem>>, vector<1x1x32xf32>
    %346 = vector.shape_cast %345 : vector<1x1x32xf32> to vector<1x32xf32>
    %347 = vector.broadcast %346 : vector<1x32xf32> to vector<8x32xf32>
    %348 = arith.addf %344, %347 : vector<8x32xf32>
    %349 = arith.addf %348, %324 : vector<8x32xf32>
    %c1_155 = arith.constant 1 : index
    %c0_156 = arith.constant 0 : index
    %c0_157 = arith.constant 0 : index
    %350 = vector.load %arg15[%c1_155, %c0_156, %c0_157] : memref<2x1x32xf32, #tpu.memory_space<vmem>>, vector<1x1x32xf32>
    %351 = vector.shape_cast %350 : vector<1x1x32xf32> to vector<1x32xf32>
    %c1_158 = arith.constant 1 : index
    %c0_159 = arith.constant 0 : index
    %c0_160 = arith.constant 0 : index
    %352 = vector.load %arg16[%c1_158, %c0_159, %c0_160] : memref<2x1x32xf32, #tpu.memory_space<vmem>>, vector<1x1x32xf32>
    %353 = vector.shape_cast %352 : vector<1x1x32xf32> to vector<1x32xf32>
    %cst_161 = arith.constant dense<0.000000e+00> : vector<8xf32>
    %354 = vector.multi_reduction <add>, %349, %cst_161 [1] : vector<8x32xf32> to vector<8xf32>
    %355 = vector.shape_cast %354 : vector<8xf32> to vector<8x1xf32>
    %cst_162 = arith.constant 3.200000e+01 : f32
    %356 = vector.broadcast %cst_162 : f32 to vector<8x1xf32>
    %357 = arith.divf %355, %356 : vector<8x1xf32>
    %358 = vector.broadcast %357 : vector<8x1xf32> to vector<8x32xf32>
    %359 = arith.subf %349, %358 : vector<8x32xf32>
    %360 = arith.mulf %359, %359 : vector<8x32xf32>
    %cst_163 = arith.constant dense<0.000000e+00> : vector<8xf32>
    %361 = vector.multi_reduction <add>, %360, %cst_163 [1] : vector<8x32xf32> to vector<8xf32>
    %362 = vector.shape_cast %361 : vector<8xf32> to vector<8x1xf32>
    %cst_164 = arith.constant 3.200000e+01 : f32
    %363 = vector.broadcast %cst_164 : f32 to vector<8x1xf32>
    %364 = arith.divf %362, %363 : vector<8x1xf32>
    %cst_165 = arith.constant 9.99999996E-13 : f32
    %365 = vector.broadcast %cst_165 : f32 to vector<8x1xf32>
    %366 = arith.addf %364, %365 : vector<8x1xf32>
    %367 = math.rsqrt %366 : vector<8x1xf32>
    %368 = vector.broadcast %367 : vector<8x1xf32> to vector<8x32xf32>
    %369 = arith.mulf %359, %368 : vector<8x32xf32>
    %370 = vector.broadcast %351 : vector<1x32xf32> to vector<8x32xf32>
    %371 = arith.mulf %369, %370 : vector<8x32xf32>
    %372 = vector.broadcast %353 : vector<1x32xf32> to vector<8x32xf32>
    %373 = arith.addf %371, %372 : vector<8x32xf32>
    %374 = vector.extract_strided_slice %373 {offsets = [0, 0], sizes = [1, 32], strides = [1, 1]} : vector<8x32xf32> to vector<1x32xf32>
    %c0_166 = arith.constant 0 : index
    %c0_167 = arith.constant 0 : index
    %375 = vector.load %arg17[%c0_166, %c0_167] : memref<32x32xf32, #tpu.memory_space<vmem>>, vector<32x32xf32>
    %cst_168 = arith.constant dense<0.000000e+00> : vector<1x32xf32>
    %376 = tpu.matmul %374, %375, %cst_168 {dimension_numbers = #tpu.dot_dimension_numbers<[1], [0], [0], [1], [0, 0, 1, 1], [], []>} : vector<1x32xf32>, vector<32x32xf32>, vector<1x32xf32> -> vector<1x32xf32>
    %c0_169 = arith.constant 0 : index
    %c0_170 = arith.constant 0 : index
    %377 = vector.load %arg18[%c0_169, %c0_170] : memref<1x32xf32, #tpu.memory_space<vmem>>, vector<1x32xf32>
    %378 = arith.addf %376, %377 : vector<1x32xf32>
    %379 = math.tanh %378 : vector<1x32xf32>
    %c0_171 = arith.constant 0 : index
    %c0_172 = arith.constant 0 : index
    %380 = vector.load %arg19[%c0_171, %c0_172] : memref<32x128xf32, #tpu.memory_space<vmem>>, vector<32x128xf32>
    %cst_173 = arith.constant dense<0.000000e+00> : vector<1x128xf32>
    %381 = tpu.matmul %379, %380, %cst_173 {dimension_numbers = #tpu.dot_dimension_numbers<[1], [0], [0], [1], [0, 0, 1, 1], [], []>} : vector<1x32xf32>, vector<32x128xf32>, vector<1x128xf32> -> vector<1x128xf32>
    %c0_174 = arith.constant 0 : index
    %c0_175 = arith.constant 0 : index
    %382 = vector.load %arg20[%c0_174, %c0_175] : memref<1x128xf32, #tpu.memory_space<vmem>>, vector<1x128xf32>
    %383 = arith.addf %381, %382 : vector<1x128xf32>
    %c0_176 = arith.constant 0 : index
    %c0_177 = arith.constant 0 : index
    %c0_178 = arith.constant 0 : index
    %384 = vector.load %arg21[%c0_176, %c0_177, %c0_178] : memref<1x1x128xf32, #tpu.memory_space<vmem>>, vector<1x1x128xf32>
    %385 = vector.shape_cast %384 : vector<1x1x128xf32> to vector<1x128xf32>
    %386 = vector.shape_cast %383 : vector<1x128xf32> to vector<1x1x128xf32>
    tpu.vector_store %arg21[%c0_176, %c0_177, %c0_178], %386 {strides = array<i32>} : memref<1x1x128xf32, #tpu.memory_space<vmem>>, vector<1x1x128xf32>,
    return
  }
  func.func @transform_0(%arg0: i32) -> (i32, i32, i32) {
    %c0_i32 = arith.constant 0 : i32
    %c0_i32_0 = arith.constant 0 : i32
    %c0_i32_1 = arith.constant 0 : i32
    return %arg0, %c0_i32, %c0_i32_0 : i32, i32, i32
  }
  func.func @transform_1(%arg0: i32) -> (i32, i32, i32) {
    %c0_i32 = arith.constant 0 : i32
    %c0_i32_0 = arith.constant 0 : i32
    %c0_i32_1 = arith.constant 0 : i32
    return %arg0, %c0_i32, %c0_i32_0 : i32, i32, i32
  }
  func.func @transform_2(%arg0: i32) -> (i32, i32) {
    %c0_i32 = arith.constant 0 : i32
    %c0_i32_0 = arith.constant 0 : i32
    %c0_i32_1 = arith.constant 0 : i32
    return %c0_i32, %c0_i32_0 : i32, i32
  }
  func.func @transform_3(%arg0: i32) -> (i32, i32) {
    %c0_i32 = arith.constant 0 : i32
    %c0_i32_0 = arith.constant 0 : i32
    %c0_i32_1 = arith.constant 0 : i32
    return %c0_i32, %c0_i32_0 : i32, i32
  }
  func.func @transform_4(%arg0: i32) -> (i32, i32, i32) {
    %c0_i32 = arith.constant 0 : i32
    %c0_i32_0 = arith.constant 0 : i32
    %c0_i32_1 = arith.constant 0 : i32
    %c0_i32_2 = arith.constant 0 : i32
    return %c0_i32, %c0_i32_0, %c0_i32_1 : i32, i32, i32
  }
  func.func @transform_5(%arg0: i32) -> (i32, i32, i32) {
    %c0_i32 = arith.constant 0 : i32
    %c0_i32_0 = arith.constant 0 : i32
    %c0_i32_1 = arith.constant 0 : i32
    %c0_i32_2 = arith.constant 0 : i32
    return %c0_i32, %c0_i32_0, %c0_i32_1 : i32, i32, i32
  }
  func.func @transform_6(%arg0: i32) -> (i32, i32, i32) {
    %c0_i32 = arith.constant 0 : i32
    %c0_i32_0 = arith.constant 0 : i32
    %c0_i32_1 = arith.constant 0 : i32
    %c0_i32_2 = arith.constant 0 : i32
    return %c0_i32, %c0_i32_0, %c0_i32_1 : i32, i32, i32
  }
  func.func @transform_7(%arg0: i32) -> (i32, i32, i32) {
    %c0_i32 = arith.constant 0 : i32
    %c0_i32_0 = arith.constant 0 : i32
    %c0_i32_1 = arith.constant 0 : i32
    %c0_i32_2 = arith.constant 0 : i32
    return %c0_i32, %c0_i32_0, %c0_i32_1 : i32, i32, i32
  }
  func.func @transform_8(%arg0: i32) -> (i32, i32, i32) {
    %c0_i32 = arith.constant 0 : i32
    %c0_i32_0 = arith.constant 0 : i32
    %c0_i32_1 = arith.constant 0 : i32
    %c0_i32_2 = arith.constant 0 : i32
    return %c0_i32, %c0_i32_0, %c0_i32_1 : i32, i32, i32
  }
  func.func @transform_9(%arg0: i32) -> (i32, i32, i32) {
    %c0_i32 = arith.constant 0 : i32
    %c0_i32_0 = arith.constant 0 : i32
    %c0_i32_1 = arith.constant 0 : i32
    %c0_i32_2 = arith.constant 0 : i32
    return %c0_i32, %c0_i32_0, %c0_i32_1 : i32, i32, i32
  }
  func.func @transform_10(%arg0: i32) -> (i32, i32, i32) {
    %c0_i32 = arith.constant 0 : i32
    %c0_i32_0 = arith.constant 0 : i32
    %c0_i32_1 = arith.constant 0 : i32
    %c0_i32_2 = arith.constant 0 : i32
    return %c0_i32, %c0_i32_0, %c0_i32_1 : i32, i32, i32
  }
  func.func @transform_11(%arg0: i32) -> (i32, i32, i32) {
    %c0_i32 = arith.constant 0 : i32
    %c0_i32_0 = arith.constant 0 : i32
    %c0_i32_1 = arith.constant 0 : i32
    %c0_i32_2 = arith.constant 0 : i32
    return %c0_i32, %c0_i32_0, %c0_i32_1 : i32, i32, i32
  }
  func.func @transform_12(%arg0: i32) -> (i32, i32, i32) {
    %c0_i32 = arith.constant 0 : i32
    %c0_i32_0 = arith.constant 0 : i32
    %c0_i32_1 = arith.constant 0 : i32
    %c0_i32_2 = arith.constant 0 : i32
    return %c0_i32, %c0_i32_0, %c0_i32_1 : i32, i32, i32
  }
  func.func @transform_13(%arg0: i32) -> (i32, i32, i32) {
    %c0_i32 = arith.constant 0 : i32
    %c0_i32_0 = arith.constant 0 : i32
    %c0_i32_1 = arith.constant 0 : i32
    %c0_i32_2 = arith.constant 0 : i32
    return %c0_i32, %c0_i32_0, %c0_i32_1 : i32, i32, i32
  }
  func.func @transform_14(%arg0: i32) -> (i32, i32, i32) {
    %c0_i32 = arith.constant 0 : i32
    %c0_i32_0 = arith.constant 0 : i32
    %c0_i32_1 = arith.constant 0 : i32
    %c0_i32_2 = arith.constant 0 : i32
    return %c0_i32, %c0_i32_0, %c0_i32_1 : i32, i32, i32
  }
  func.func @transform_15(%arg0: i32) -> (i32, i32, i32) {
    %c0_i32 = arith.constant 0 : i32
    %c0_i32_0 = arith.constant 0 : i32
    %c0_i32_1 = arith.constant 0 : i32
    %c0_i32_2 = arith.constant 0 : i32
    return %c0_i32, %c0_i32_0, %c0_i32_1 : i32, i32, i32
  }
  func.func @transform_16(%arg0: i32) -> (i32, i32) {
    %c0_i32 = arith.constant 0 : i32
    %c0_i32_0 = arith.constant 0 : i32
    %c0_i32_1 = arith.constant 0 : i32
    return %c0_i32, %c0_i32_0 : i32, i32
  }
  func.func @transform_17(%arg0: i32) -> (i32, i32) {
    %c0_i32 = arith.constant 0 : i32
    %c0_i32_0 = arith.constant 0 : i32
    %c0_i32_1 = arith.constant 0 : i32
    return %c0_i32, %c0_i32_0 : i32, i32
  }
  func.func @transform_18(%arg0: i32) -> (i32, i32) {
    %c0_i32 = arith.constant 0 : i32
    %c0_i32_0 = arith.constant 0 : i32
    %c0_i32_1 = arith.constant 0 : i32
    return %c0_i32, %c0_i32_0 : i32, i32
  }
  func.func @transform_19(%arg0: i32) -> (i32, i32) {
    %c0_i32 = arith.constant 0 : i32
    %c0_i32_0 = arith.constant 0 : i32
    %c0_i32_1 = arith.constant 0 : i32
    return %c0_i32, %c0_i32_0 : i32, i32
  }
  func.func @transform_20(%arg0: i32) -> (i32, i32, i32) {
    %c0_i32 = arith.constant 0 : i32
    %c0_i32_0 = arith.constant 0 : i32
    %c0_i32_1 = arith.constant 0 : i32
    return %arg0, %c0_i32, %c0_i32_0 : i32, i32, i32
  }
}

</mosaic_0001>

<bundles_post_ra>
// kernel: bert_classifier_forward.1
= control target key start
LH: loop header
LB: loop body
LE: loop exit
PB: predicated region body
PF: predicated region fallthrough
CT: control target
= control target key end

     0   :  { %s2822_s0 = inlined_call_operand.vmem [shape: f32[2,8,32], index: 0, kind: input, shape index: {}]   ;;  %s2823_s1 = inlined_call_operand.vmem [shape: f32[2,1,8], index: 1, kind: input, shape index: {}]   ;;  %s2824_s2 = inlined_call_operand.vmem [shape: f32[1,32], index: 2, kind: input, shape index: {}]   ;;  %s2825_s3 = inlined_call_operand.vmem [shape: f32[1,32], index: 3, kind: input, shape index: {}]   ;;  %s2826_s4 = inlined_call_operand.vmem [shape: f32[2,32,96], index: 4, kind: input, shape index: {}]   ;;  %s2827_s5 = inlined_call_operand.vmem [shape: f32[2,1,96], index: 5, kind: input, shape index: {}]   ;;  %s2828_s6 = inlined_call_operand.vmem [shape: f32[2,32,32], index: 6, kind: input, shape index: {}]   ;;  %s2829_s7 = inlined_call_operand.vmem [shape: f32[2,1,32], index: 7, kind: input, shape index: {}]   ;;  %s2830_s8 = inlined_call_operand.vmem [shape: f32[2,1,32], index: 8, kind: input, shape index: {}]   ;;  %s2831_s9 = inlined_call_operand.vmem [shape: f32[2,1,32], index: 9, kind: input, shape index: {}]   ;;  %s2832_s10 = inlined_call_operand.vmem [shape: f32[2,32,64], index: 10, kind: input, shape index: {}]   ;;  %s2833_s11 = inlined_call_operand.vmem [shape: f32[2,1,64], index: 11, kind: input, shape index: {}]   ;;  %s2834_s12 = inlined_call_operand.vmem [shape: f32[2,64,32], index: 12, kind: input, shape index: {}]   ;;  %s2835_s13 = inlined_call_operand.vmem [shape: f32[2,1,32], index: 13, kind: input, shape index: {}]   ;;  %s2836_s14 = inlined_call_operand.vmem [shape: f32[2,1,32], index: 14, kind: input, shape index: {}]   ;;  %s2837_s15 = inlined_call_operand.vmem [shape: f32[2,1,32], index: 15, kind: input, shape index: {}]   ;;  %s2838_s16 = inlined_call_operand.vmem [shape: f32[32,32], index: 16, kind: input, shape index: {}]   ;;  %s2839_s17 = inlined_call_operand.vmem [shape: f32[1,32], index: 17, kind: input, shape index: {}]   ;;  %s2840_s18 = inlined_call_operand.vmem [shape: f32[32,128], index: 18, kind: input, shape index: {}]   ;;  %s2841_s19 = inlined_call_operand.vmem [shape: f32[1,128], index: 19, kind: input, shape index: {}]   ;;  %s2842_s20 = inlined_call_operand.hbm [shape: f32[2,1,128], index: 20, kind: output, shape index: {}]  }
   0x1   :  { %2860 = sst [smem:[#allocation10_spill]] %s2822_s0 }
   0x2   :  { %2861 = sst [smem:[#allocation11_spill]] %s2823_s1 }
   0x3   :  { %2862 = sst [smem:[#allocation12_spill]] %s2824_s2 }
   0x4   :  { %2863 = sst [smem:[#allocation13_spill]] %s2825_s3 }
   0x5   :  { %2864 = sst [smem:[#allocation14_spill]] %s2826_s4 }
   0x6   :  { %2865 = sst [smem:[#allocation15_spill]] %s2827_s5 }
   0x7   :  { %2866 = sst [smem:[#allocation16_spill]] %s2828_s6 }
   0x8   :  { %2867 = sst [smem:[#allocation17_spill]] %s2829_s7 }
   0x9   :  { %25 = vsyncpa [#allocation3], 0 }
   0xa   :  { %27 = vsyncpa [#allocation3 + $0x1], 0  ;;  %s2364_s1 = smov 0   ;;  %s2366_s22 = smov 0  }
   0xb   :  { %s2368_s23 = smov 0   ;;  %s2370_s24 = smov 0  }
   0xc LB: > { %2868 = sst [smem:[#allocation5_spill]] %s2233_s1  ;;  %s2385_s2 = sadd.s32 4294967295, %s2245_s24   ;;  %s2245_s24 = sphi %s2370_s24, %s2896_s24   ;;  %s2241_s23 = sphi %s2368_s23, %s2898_s23   ;;  %s2237_s22 = sphi %s2366_s22, %s2900_s22   ;;  %s2233_s1 = sphi %s2364_s1, %s2899_s1  }
   0xd   : > { %2869 = sst [smem:[#allocation6_spill]] %s2241_s23  ;;  %s1986_s25 = sadd.s32 4294967294, %s2245_s24  }
   0xe   : > { %s2389_s3 = sadd.s32 1, %s2245_s24   ;;  %s470_s26 = sadd.s32 1, %s2241_s23 }
   0xf   : > { %2870 = sst [smem:[#allocation7_spill]] %s2389_s3  ;;  %s467_s27 = ssub.s32 %s2245_s24, %s2389_s3 }
  0x10   : > { %p480_p0 = scmp.ne.s32.totalorder %s2241_s23, %s2237_s22  ;;  %p468_p1 = scmp.eq.s32.totalorder %s467_s27, 0 }
  0x11   : > { %p481_p2 = scmp.eq.s32.totalorder %s2385_s2, 1  ;;  %p486_p3 = scmp.ne.s32.totalorder %s2237_s22, %s2233_s1 }
  0x12   : > { %p487_p4 = scmp.eq.s32.totalorder %s1986_s25, 1  ;;  %p1989_p7 = scmp.ge.s32.totalorder %s2245_s24, 1 }
  0x13   : > { %s2400_s28 = scalar_select %p468_p1, %s2241_s23, %s470_s26  }
  0x14   : > { %p2402_p5 = por %p481_p2, %p480_p0  ;;  %p2406_p6 = por %p487_p4, %p486_p3 }
  0x15   : > { %2871 = sst [smem:[#allocation8_spill]] %s2400_s28  ;;  %p572_p8 = scmp.lt.s32.totalorder %s2245_s24, 3 }
  0x16   : > { %s2873_s29 = scalar_select %p2406_p6, 1, 0 }
  0x17   : > { %p573_p9 = pnand %p1989_p7, %p572_p8 }
  0x18   : > { %2874 = sst [smem:[#allocation9_spill]] %s2873_s29  ;;  %p631_p10 = scmp.lt.s32.totalorder (!%p573_p9), %s2385_s2, 1 }
  0x19   : > { %576 = sbr.rel (%p573_p9) target bundleno = 5117 (0x13fd), region = 100  ;;  %s2875_s26 = sld [smem:[#allocation11_spill]] (!%p573_p9) }
  0x1a   : > { %s2876_s3 = sld [smem:[#allocation10_spill]] (!%p573_p9)  ;;  %s2248_s23 = smov (!%p573_p9), 88  }
  0x1b   : > { %s2877_s28 = sld [smem:[#allocation14_spill]] (!%p573_p9)  ;;  %s2850_s27 = smov (!%p573_p9), 80  }
  0x1c   : > { %s2878_s1 = sld [smem:[#allocation12_spill]] (!%p573_p9)  ;;  %s2857_s25 = smov (!%p573_p9), 64  }
  0x1d   : > { %s2880_s5 = sld [smem:[#allocation15_spill]] (!%p573_p9) }
  0x1e   : > { %s2414_s30 = scalar_select %p631_p10, %s2385_s2, 1  ;;  %vm642_vm0 = vcmask 261120   ;;  %v2247_v2 = vmov 32.0   ;;  %vm718_vm5 = vcmask 64512   ;;  %vm1205_vm13 = vcmask 523264  }
  0x1f   : > { %2133 = vrcp.f32 %v2247_v2  ;;  %s2882_s6 = sld [smem:[#allocation16_spill]] }
  0x20   : > { %s1990_s0 = sshll.u32 %s2414_s30, 3  ;;  %s2881_s21 = scalar_lea.vmem %s2875_s26, %s2414_s30 }
  0x21   : > { %s634_s29 = scalar_lea.vmem %s2876_s3, %s1990_s0  ;;  %v683_v14 = vld [vmem:[%s2877_s28 + $0x18] sm:$0xff]  ;;  %v682_v15 = vld [vmem:[%s2877_s28 + $0x10] sm:$0xff]  ;;  %v681_v16 = vld [vmem:[%s2877_s28 + $0x8] sm:$0xff]  ;;  %s2879_s0 = sld [smem:[#allocation13_spill]] }
  0x22   : > { %v639_v0 = vld [vmem:[%s634_s29] sm:$0xff]  ;;  %703 = vmatpush.msra.mxu0 %v683_v14  ;;  %s2859_s3 = smov 96   ;;  %s2856_s30 = smov 120  }
  0x23   : > { %v643_v1 = vsel %vm642_vm0, %v639_v0, 0.0  ;;  %v680_v17 = vld [vmem:[%s2877_s28] sm:$0xff]  ;;  %s2851_s29 = smov 104   ;;  %s2883_s7 = sld [smem:[#allocation17_spill]] }
  0x24   : > { %644 = vadd.xlane.f32.xlu0 %v643_v1  ;;  %704 = vmatpush.msra.mxu0 %v682_v15  ;;  %v2115_v27 = vld [vmem:[%s2878_s1] ss:$0 sm:$0xff]  ;;  %s2855_s1 = smov 72  }
  0x25   : > { %v2134_v3 = vpop.eup %2133  ;;  %v2117_v33 = vld [vmem:[%s2880_s5] ss:$0 sm:$0xff] }
  0x26   : > { %v647_v4 = vmul.f32 32.0, %v2134_v3  ;;  %vm651_vm1 = vweird.f32 %v2134_v3  ;;  %705 = vmatpush.msra.mxu0 %v681_v16  ;;  %v2475_v40 = vld [vmem:[%s2881_s21] ss:$0 sm:$0xff]  ;;  %s2854_s21 = smov 56  }
  0x27   : > { %v2116_v30 = vld [vmem:[%s2879_s0] ss:$0 sm:$0xff]  ;;  %s2858_s0 = smov 112  }
  0x28   : > { %v648_v5 = vsub.f32 1.0, %v647_v4  ;;  %706 = vmatpush.msra.mxu0 %v680_v17  ;;  %v711_v50 = vld [vmem:[%s2882_s6] sm:$0xff] }
  0x2a   : > { %v649_v6 = vmul.f32 %v2134_v3, %v648_v5 }
  0x2c   : > { %v650_v7 = vadd.f32 %v2134_v3, %v649_v6 }
  0x2e   : > { %v2425_v8 = vsel %vm651_vm1, %v2134_v3, %v650_v7 }
  0x97   : > { %v645_v9 = vpop.xlane.xlu0 %644 }
  0x98   : > { %v653_v10 = vmul.f32 %v2425_v8, %v645_v9 }
  0x9a   : > { %v654_v11 = vsub.f32 %v639_v0, %v653_v10 }
  0x9c   : > { %v655_v12 = vmul.f32 %v654_v11, %v654_v11 }
  0x9e   : > { %v656_v13 = vsel %vm642_vm0, %v655_v12, 0.0 }
  0x9f   : > { %657 = vadd.xlane.f32.xlu0 %v656_v13 }
 0x112   : > { %v658_v18 = vpop.xlane.xlu0 %657 }
 0x113   : > { %v659_v19 = vmul.f32 %v658_v18, %v2425_v8 }
 0x115   : > { %v660_v20 = vadd.f32 1e-12, %v659_v19 }
 0x117   : > { %2135 = vrsqrt.f32 %v660_v20  ;;  %vm667_vm3 = vweird.f32 %v660_v20 }
 0x11d   : > { %v2136_v21 = vpop.eup %2135 }
 0x11e   : > { %v662_v22 = vmul.f32 %v2136_v21, %v660_v20  ;;  %vm668_vm2 = vweird.f32 %v2136_v21 }
 0x11f   : > { %vm669_vm4 = vmor %vm667_vm3, %vm668_vm2 }
 0x120   : > { %v663_v23 = vmul.f32 %v2136_v21, %v662_v22 }
 0x122   : > { %v664_v24 = vmul.f32 0.5, %v663_v23 }
 0x124   : > { %v665_v25 = vsub.f32 1.5, %v664_v24 }
 0x126   : > { %v666_v26 = vmul.f32 %v2136_v21, %v665_v25 }
 0x128   : > { %v670_v28 = vsel %vm669_vm4, %v2136_v21, %v666_v26 }
 0x129   : > { %v671_v29 = vmul.f32 %v670_v28, %v654_v11 }
 0x12b   : > { %v675_v31 = vmul.f32 %v2115_v27, %v671_v29 }
 0x12d   : > { %v2448_v32 = vadd.f32 %v2116_v30, %v675_v31 }
 0x12f   : > { %1991 = vmatmul.msk.f32.vlgmr.msra.gmra.mxu0 %vm642_vm0, %v2448_v32 }
 0x1ac   : > { %v708_v34 = vpop.f32.mrf.mxu0 }
 0x1ad   : > { %v2455_v35 = vadd.f32 %v2117_v33, %v708_v34 }
 0x1af   : > { %787 = vrot.lane.b32.xlu0 %v2455_v35, %s2248_s23  ;;  %716 = vrot.lane.b32.xlu1 %v2455_v35, %s2859_s3  ;;  %s2889_s3 = smov 104  }
 0x1b7   : > { %991 = vrot.lane.b32.xlu0 %v2455_v35, %s2855_s1  ;;  %s2884_s1 = smov 96  }
 0x1bf   : > { %900 = vrot.lane.b32.xlu0 %v2455_v35, %s2850_s27  ;;  %s2853_s27 = smov 48  }
 0x221   : > { %v788_v36 = vpop.permute.xlu0 %787  ;;  %v717_v37 = vpop.permute.xlu1 %716 }
 0x222   : > { %1992 = vmatpush.xpose.msk.msra.mxu1 %vm718_vm5, %v717_v37  ;;  %1995 = vmatpush.xpose.msk.msra.mxu3 %vm718_vm5, %v788_v36 }
 0x225   : > { %1993 = vmatmul.msk.f32.vlgmr.msra.gmra.mxu1 %vm718_vm5, %v2455_v35 }
 0x226   : > { %893 = vmatpush.msrb.mxu3 %v711_v50 }
 0x229   : > { %v992_v38 = vpop.permute.xlu0 %991 }
 0x231   : > { %v901_v39 = vpop.permute.xlu0 %900 }
 0x232   : > { %2000 = vmatpush.xpose.msk.msrb.mxu0 %vm718_vm5, %v901_v39 }
 0x2a2   : > { %v740_v41 = vpop.f32.mrf.mxu1 }
 0x2a3   : > { %v743_v42 = vmul.f32 0.35355338, %v740_v41 }
 0x2a5   : > { %v747_v43 = vadd.f32 %v2475_v40, %v743_v42  ;;  %v714_v42 = vld [vmem:[%s2882_s6 + $0x18] sm:$0xff] }
 0x2a7   : > { %v748_v44 = vsel %vm718_vm5, %v747_v43, -inf }
 0x2a8   : > { %749 = vmax.xlane.f32.xlu1 %v748_v44 }
 0x31b   : > { %v750_v45 = vpop.xlane.xlu1 %749 }
 0x31c   : > { %v751_v46 = vsub.f32 %v747_v43, %v750_v45 }
 0x31e   : > { %v752_v47 = vmul.f32 1.442695, %v751_v46 }
 0x320   : > { %2137 = vpow2.f32 %v752_v47 }
 0x326   : > { %v2138_v48 = vpop.eup %2137 }
 0x327   : > { %v754_v49 = vsel %vm718_vm5, %v2138_v48, 0.0 }
 0x328   : > { %755 = vadd.xlane.f32.xlu2 %v754_v49 }
 0x340   : > { %759 = vrot.lane.b32.xlu2 %v2455_v35, %s2857_s25  ;;  %s2887_s25 = smov 120  }
 0x348   : > { %785 = vrot.lane.b32.xlu2 %v2455_v35, %s2856_s30  ;;  %s2888_s30 = smov 72  }
 0x350   : > { %989 = vrot.lane.b32.xlu2 %v2455_v35, %s2851_s29  ;;  %s2852_s29 = smov 40  }
 0x358   : > { %898 = vrot.lane.b32.xlu2 %v2455_v35, %s2858_s0 }
 0x39b   : > { %v756_v51 = vpop.xlane.xlu2 %755 }
 0x39c   : > { %2139 = vrcp.f32 %v756_v51 }
 0x3a2   : > { %v2140_v52 = vpop.eup %2139 }
 0x3a3   : > { %v760_v53 = vpop.permute.xlu2 %759  ;;  %v758_v54 = vmul.f32 %v2140_v52, %v2138_v48  ;;  %v2118_v48 = vld [vmem:[%s2883_s7] ss:$0 sm:$0xff] }
 0x3a4   : > { %780 = vmatpush.msra.mxu2 %v760_v53 }
 0x3a5   : > { %1994 = vmatmul.msk.f32.vlgmr.msra.gmra.mxu2 %vm718_vm5, %v758_v54 }
 0x3ab   : > { %v786_v55 = vpop.permute.xlu2 %785 }
 0x3ac   : > { %1996 = vmatmul.msk.f32.vlgmr.msra.gmra.mxu3 %vm718_vm5, %v786_v55 }
 0x3ad   : > { %2004 = vmatpush.xpose.msk.msra.mxu3 %vm718_vm5, %v992_v38  ;;  %v713_v38 = vld [vmem:[%s2882_s6 + $0x10] sm:$0xff] }
 0x3b3   : > { %v990_v56 = vpop.permute.xlu2 %989 }
 0x3bb   : > { %v899_v57 = vpop.permute.xlu2 %898 }
 0x3bc   : > { %2001 = vmatmul.msk.f32.vlgmr.msrb.gmra.mxu0 %vm718_vm5, %v899_v57 }
 0x428   : > { %v782_v58 = vpop.f32.mrf.mxu2 }
 0x429   : > { %1999 = vmatmul.msk.f32.vlgmr.msrb.gmra.mxu3 %vm718_vm5, %v782_v58 }
 0x42f   : > { %v810_v59 = vpop.f32.mrf.mxu3 }
 0x430   : > { %v813_v60 = vmul.f32 0.35355338, %v810_v59  ;;  %v1121_v59 = vld [vmem:[%s2832_s10 + $0x18] sm:$0xff] }
 0x431   : > { %2005 = vmatmul.msk.f32.vlgmr.msra.gmra.mxu3 %vm718_vm5, %v990_v56 }
 0x432   : > { %v814_v61 = vadd.f32 %v2475_v40, %v813_v60  ;;  %v1119_v60 = vld [vmem:[%s2832_s10 + $0x8] sm:$0xff] }
 0x434   : > { %v815_v62 = vsel %vm718_vm5, %v814_v61, -inf }
 0x435   : > { %816 = vmax.xlane.f32.xlu1 %v815_v62 }
 0x439   : > { %v923_v63 = vpop.f32.mrf.mxu0 }
 0x43a   : > { %v926_v0 = vmul.f32 0.35355338, %v923_v63 }
 0x43c   : > { %v927_v1 = vadd.f32 %v2475_v40, %v926_v0 }
 0x43e   : > { %v928_v2 = vsel %vm718_vm5, %v927_v1, -inf }
 0x43f   : > { %929 = vmax.xlane.f32.xlu0 %v928_v2 }
 0x4a8   : > { %v817_v3 = vpop.xlane.xlu1 %816 }
 0x4a9   : > { %v818_v4 = vsub.f32 %v814_v61, %v817_v3  ;;  %v1118_v61 = vld [vmem:[%s2832_s10] sm:$0xff] }
 0x4ab   : > { %v819_v5 = vmul.f32 1.442695, %v818_v4 }
 0x4ac   : > { %v2501_v6 = vpop.f32.mrf.mxu3 }
 0x4ad   : > { %2141 = vpow2.f32 %v819_v5 }
 0x4b2   : > { %v930_v7 = vpop.xlane.xlu0 %929 }
 0x4b3   : > { %v2142_v9 = vpop.eup %2141  ;;  %v931_v10 = vsub.f32 %v927_v1, %v930_v7  ;;  %v2119_v7 = vld [vmem:[%s2830_s8] ss:$0 sm:$0xff] }
 0x4b4   : > { %v1014_v11 = vpop.f32.mrf.mxu3  ;;  %v821_v12 = vsel %vm718_vm5, %v2142_v9, 0.0 }
 0x4b5   : > { %v932_v13 = vmul.f32 1.442695, %v931_v10  ;;  %v1017_v14 = vmul.f32 0.35355338, %v1014_v11  ;;  %822 = vadd.xlane.f32.xlu1 %v821_v12  ;;  %v2120_v11 = vld [vmem:[%s2831_s9] ss:$0 sm:$0xff] }
 0x4b7   : > { %2143 = vpow2.f32 %v932_v13  ;;  %v1018_v15 = vadd.f32 %v2475_v40, %v1017_v14  ;;  %v2121_v14 = vld [vmem:[%s2833_s11] ss:$0 sm:$0xff] }
 0x4b9   : > { %v1019_v16 = vsel %vm718_vm5, %v1018_v15, -inf }
 0x4ba   : > { %1020 = vmax.xlane.f32.xlu2 %v1019_v16 }
 0x4bd   : > { %v2144_v17 = vpop.eup %2143 }
 0x4be   : > { %v934_v18 = vsel %vm718_vm5, %v2144_v17, 0.0 }
 0x4bf   : > { %935 = vadd.xlane.f32.xlu1 %v934_v18 }
 0x4d2   : > { %939 = vrot.lane.b32.xlu2 %v2455_v35, %s2853_s27 }
 0x4d8   : > { %826 = vrot.lane.b32.xlu1 %v2455_v35, %s2854_s21  ;;  %s2890_s21 = smov 80  }
 0x4e0   : > { %1030 = vrot.lane.b32.xlu1 %v2455_v35, %s2852_s29  ;;  %v712_v35 = vld [vmem:[%s2882_s6 + $0x8] sm:$0xff]  ;;  %s2885_s29 = smov 112  }
 0x4e1   : > { %870 = vmatpush.msrb.mxu1 %v712_v35  ;;  %v1195_v35 = vld [vmem:[%s2834_s12 + $0x10] sm:$0xff] }
 0x4e3   : > { %983 = vmatpush.msra.mxu1 %v713_v38 }
 0x528   : > { %v823_v24 = vpop.xlane.xlu1 %822 }
 0x52d   : > { %v1021_v19 = vpop.xlane.xlu2 %1020 }
 0x52e   : > { %v1022_v20 = vsub.f32 %v1018_v15, %v1021_v19 }
 0x530   : > { %v1023_v21 = vmul.f32 1.442695, %v1022_v20  ;;  %v1200_v20 = vld [vmem:[%s2834_s12 + $0x38] sm:$0xff] }
 0x531   : > { %1217 = vmatpush.msrb.mxu3 %v1200_v20 }
 0x532   : > { %2145 = vpow2.f32 %v1023_v21  ;;  %v936_v25 = vpop.xlane.xlu1 %935 }
 0x533   : > { %2147 = vrcp.f32 %v823_v24 }
 0x534   : > { %2149 = vrcp.f32 %v936_v25 }
 0x535   : > { %v940_v29 = vpop.permute.xlu2 %939 }
 0x538   : > { %v2146_v22 = vpop.eup %2145 }
 0x539   : > { %v1025_v23 = vsel %vm718_vm5, %v2146_v22, 0.0  ;;  %v2148_v26 = vpop.eup %2147 }
 0x53a   : > { %1026 = vadd.xlane.f32.xlu0 %v1025_v23  ;;  %v825_v28 = vmul.f32 %v2148_v26, %v2142_v9  ;;  %v2150_v30 = vpop.eup %2149  ;;  %v1199_v23 = vld [vmem:[%s2834_s12 + $0x30] sm:$0xff]  ;;  %v1198_v26 = vld [vmem:[%s2834_s12 + $0x28] sm:$0xff] }
 0x53b   : > { %v938_v31 = vmul.f32 %v2150_v30, %v2144_v17  ;;  %1218 = vmatpush.msrb.mxu3 %v1199_v23 }
 0x53d   : > { %1219 = vmatpush.msrb.mxu3 %v1198_v26 }
 0x54a   : > { %v827_v27 = vpop.permute.xlu1 %826 }
 0x54b   : > { %847 = vmatpush.msrb.mxu2 %v827_v27 }
 0x54c   : > { %1997 = vmatmul.msk.f32.vlgmr.msrb.gmra.mxu2 %vm718_vm5, %v825_v28 }
 0x54d   : > { %960 = vmatpush.msra.mxu2 %v940_v29  ;;  %v1197_v29 = vld [vmem:[%s2834_s12 + $0x20] sm:$0xff] }
 0x54e   : > { %1220 = vmatpush.msrb.mxu3 %v1197_v29 }
 0x54f   : > { %1074 = vmatpush.msrb.mxu2 %v714_v42 }
 0x552   : > { %v1031_v33 = vpop.permute.xlu1 %1030 }
 0x553   : > { %1051 = vmatpush.msra.mxu0 %v1031_v33 }
 0x554   : > { %2002 = vmatmul.msk.f32.vlgmr.msra.gmra.mxu2 %vm718_vm5, %v938_v31  ;;  %v1196_v31 = vld [vmem:[%s2834_s12 + $0x18] sm:$0xff] }
 0x555   : > { %1221 = vmatpush.msrb.mxu3 %v1196_v31  ;;  %v2125_v31 = vld [vmem:[%s2880_s5 + $0x1] ss:$0 sm:$0xff] }
 0x557   : > { %1222 = vmatpush.msrb.mxu3 %v1195_v35 }
 0x5ad   : > { %v1027_v34 = vpop.xlane.xlu0 %1026 }
 0x5ae   : > { %2151 = vrcp.f32 %v1027_v34 }
 0x5b4   : > { %v2152_v36 = vpop.eup %2151 }
 0x5b5   : > { %v1029_v37 = vmul.f32 %v2152_v36, %v2146_v22 }
 0x5b7   : > { %2006 = vmatmul.msk.f32.vlgmr.msra.gmra.mxu0 %vm718_vm5, %v1029_v37  ;;  %v1194_v37 = vld [vmem:[%s2834_s12 + $0x8] sm:$0xff] }
 0x5b8   : > { %1223 = vmatpush.msrb.mxu3 %v1194_v37 }
 0x5cf   : > { %v849_v39 = vpop.f32.mrf.mxu2 }
 0x5d0   : > { %1998 = vmatmul.msk.f32.vlgmr.msrb.gmra.mxu1 %vm718_vm5, %v849_v39  ;;  %v1193_v39 = vld [vmem:[%s2834_s12] sm:$0xff] }
 0x5d1   : > { %1141 = vmatpush.msrb.mxu1 %v1121_v59  ;;  %1224 = vmatpush.msrb.mxu3 %v1193_v39 }
 0x5d7   : > { %v962_v41 = vpop.f32.mrf.mxu2 }
 0x5d8   : > { %2003 = vmatmul.msk.f32.vlgmr.msra.gmra.mxu1 %vm718_vm5, %v962_v41 }
 0x634   : > { %v1053_v43 = vpop.f32.mrf.mxu0 }
 0x635   : > { %2007 = vmatmul.msk.f32.vlgmr.msrb.gmra.mxu2 %vm718_vm5, %v1053_v43 }
 0x64d   : > { %v872_v44 = vpop.f32.mrf.mxu1 }
 0x64e   : > { %v896_v46 = vadd.f32 %v2501_v6, %v872_v44 }
 0x655   : > { %v985_v45 = vpop.f32.mrf.mxu1 }
 0x656   : > { %v988_v47 = vadd.f32 %v985_v45, %v896_v46 }
 0x6b8   : > { %v1076_v49 = vpop.f32.mrf.mxu2 }
 0x6b9   : > { %v1079_v50 = vadd.f32 %v1076_v49, %v988_v47 }
 0x6bb   : > { %v1084_v51 = vadd.f32 %v2118_v48, %v1079_v50 }
 0x6bd   : > { %v1085_v52 = vadd.f32 %v1084_v51, %v2448_v32  ;;  %v1120_v32 = vld [vmem:[%s2832_s10 + $0x10] sm:$0xff] }
 0x6be   : > { %1142 = vmatpush.msrb.mxu1 %v1120_v32 }
 0x6bf   : > { %v1088_v53 = vsel %vm642_vm0, %v1085_v52, 0.0 }
 0x6c0   : > { %1089 = vadd.xlane.f32.xlu0 %v1088_v53  ;;  %1143 = vmatpush.msrb.mxu1 %v1119_v60 }
 0x6c2   : > { %1144 = vmatpush.msrb.mxu1 %v1118_v61 }
 0x733   : > { %v1090_v54 = vpop.xlane.xlu0 %1089 }
 0x734   : > { %v1091_v55 = vmul.f32 %v1090_v54, %v2425_v8 }
 0x736   : > { %v1092_v56 = vsub.f32 %v1085_v52, %v1091_v55 }
 0x738   : > { %v1093_v57 = vmul.f32 %v1092_v56, %v1092_v56 }
 0x73a   : > { %v1094_v58 = vsel %vm642_vm0, %v1093_v57, 0.0 }
 0x73b   : > { %1095 = vadd.xlane.f32.xlu1 %v1094_v58 }
 0x7ae   : > { %v1096_v62 = vpop.xlane.xlu1 %1095 }
 0x7af   : > { %v1097_v63 = vmul.f32 %v1096_v62, %v2425_v8 }
 0x7b1   : > { %v1098_v0 = vadd.f32 1e-12, %v1097_v63 }
 0x7b3   : > { %2153 = vrsqrt.f32 %v1098_v0  ;;  %vm1105_vm7 = vweird.f32 %v1098_v0 }
 0x7b9   : > { %v2154_v1 = vpop.eup %2153 }
 0x7ba   : > { %v1100_v2 = vmul.f32 %v2154_v1, %v1098_v0  ;;  %vm1106_vm6 = vweird.f32 %v2154_v1 }
 0x7bb   : > { %vm1107_vm8 = vmor %vm1105_vm7, %vm1106_vm6 }
 0x7bc   : > { %v1101_v3 = vmul.f32 %v2154_v1, %v1100_v2 }
 0x7be   : > { %v1102_v4 = vmul.f32 0.5, %v1101_v3 }
 0x7c0   : > { %v1103_v5 = vsub.f32 1.5, %v1102_v4 }
 0x7c2   : > { %v1104_v6 = vmul.f32 %v2154_v1, %v1103_v5 }
 0x7c4   : > { %v1108_v9 = vsel %vm1107_vm8, %v2154_v1, %v1104_v6  ;;  %v2122_v1 = vld [vmem:[%s2835_s13] ss:$0 sm:$0xff] }
 0x7c5   : > { %v1109_v10 = vmul.f32 %v1108_v9, %v1092_v56 }
 0x7c7   : > { %v1113_v12 = vmul.f32 %v2119_v7, %v1109_v10 }
 0x7c9   : > { %v2556_v13 = vadd.f32 %v2120_v11, %v1113_v12  ;;  %v2014_v12 = vld [vmem:[%s2877_s28 + $0x38] sm:$0xff] }
 0x7ca   : > { %1287 = vmatpush.msrb.mxu0 %v2014_v12 }
 0x7cb   : > { %2008 = vmatmul.msk.f32.vlgmr.msrb.gmra.mxu1 %vm642_vm0, %v2556_v13 }
 0x848   : > { %v1146_v15 = vpop.f32.mrf.mxu1 }
 0x849   : > { %v1147_v16 = vadd.f32 %v2121_v14, %v1146_v15  ;;  %v2012_v14 = vld [vmem:[%s2877_s28 + $0x28] sm:$0xff]  ;;  %v2011_v15 = vld [vmem:[%s2877_s28 + $0x20] sm:$0xff] }
 0x84b   : > { %v1150_v17 = vmul.f32 0.70710677, %v1147_v16  ;;  %v1149_v62 = vmul.f32 0.5, %v1147_v16 }
 0x84d   : > { %v1151_v18 = vmul.f32 %v1150_v17, %v1150_v17 }
 0x84f   : > { %v1152_v19 = vmin.f32 %v1151_v18, 16.0 }
 0x851   : > { %v1153_v21 = vmul.f32 2.1237322e-06, %v1152_v19  ;;  %v1164_v22 = vmul.f32 3.8918573e-05, %v1152_v19 }
 0x853   : > { %v1154_v24 = vadd.f32 0.00028619796, %v1153_v21  ;;  %v1165_v25 = vadd.f32 0.001143296, %v1164_v22 }
 0x855   : > { %v1155_v27 = vmul.f32 %v1154_v24, %v1152_v19  ;;  %v1166_v28 = vmul.f32 %v1165_v25, %v1152_v19  ;;  %v2123_v25 = vld [vmem:[%s2836_s14] ss:$0 sm:$0xff] }
 0x857   : > { %v1167_v30 = vadd.f32 0.014752088, %v1166_v28  ;;  %v1156_v33 = vadd.f32 0.0036580483, %v1155_v27  ;;  %v2124_v28 = vld [vmem:[%s2837_s15] ss:$0 sm:$0xff] }
 0x859   : > { %v1168_v34 = vmul.f32 %v1167_v30, %v1152_v19  ;;  %v1157_v38 = vmul.f32 %v1156_v33, %v1152_v19 }
 0x85b   : > { %v1169_v36 = vadd.f32 0.112945676, %v1168_v34  ;;  %v1158_v43 = vadd.f32 0.05243302, %v1157_v38 }
 0x85d   : > { %v1170_v41 = vmul.f32 %v1169_v36, %v1152_v19  ;;  %v1159_v46 = vmul.f32 %v1158_v43, %v1152_v19 }
 0x85f   : > { %v1171_v42 = vadd.f32 0.4994258, %v1170_v41  ;;  %v1160_v47 = vadd.f32 0.18741608, %v1159_v46 }
 0x861   : > { %v1172_v44 = vmul.f32 %v1171_v42, %v1152_v19  ;;  %v1161_v49 = vmul.f32 %v1160_v47, %v1152_v19  ;;  %v2017_v42 = vld [vmem:[%s2882_s6 + $0x20] sm:$0xff] }
 0x862   : > { %1474 = vmatpush.msra.mxu3 %v2017_v42 }
 0x863   : > { %v1173_v45 = vadd.f32 1.0, %v1172_v44  ;;  %v1162_v53 = vadd.f32 1.1283791, %v1161_v49 }
 0x865   : > { %2155 = vrcp.f32 %v1173_v45  ;;  %v1185_v52 = vand.u32 2147483648, %v1173_v45  ;;  %v1183_v55 = vand.u32 2147483647, %v1173_v45  ;;  %vm1179_vm10 = vweird.f32 %v1173_v45 }
 0x866   : > { %v1163_v58 = vmul.f32 %v1162_v53, %v1150_v17 }
 0x867   : > { %v1186_v57 = vor.u32 1.1754944e-38, %v1185_v52  ;;  %vm1184_vm12 = vcmp.eq.f32.partialorder %v1183_v55, 8.507059e+37 }
 0x86b   : > { %v2156_v48 = vpop.eup %2155 }
 0x86c   : > { %v1175_v50 = vmul.f32 %v2156_v48, %v1173_v45  ;;  %vm1180_vm9 = vweird.f32 %v2156_v48 }
 0x86d   : > { %vm1181_vm11 = vmor %vm1179_vm10, %vm1180_vm9 }
 0x86e   : > { %v1176_v51 = vsub.f32 1.0, %v1175_v50 }
 0x870   : > { %v1177_v54 = vmul.f32 %v2156_v48, %v1176_v51 }
 0x872   : > { %v1178_v56 = vadd.f32 %v2156_v48, %v1177_v54 }
 0x874   : > { %v1182_v59 = vsel %vm1181_vm11, %v2156_v48, %v1178_v56 }
 0x875   : > { %v1187_v32 = vsel %vm1184_vm12, %v1186_v57, %v1182_v59 }
 0x876   : > { %v1188_v60 = vmul.f32 %v1187_v32, %v1163_v58 }
 0x878   : > { %v2009_v61 = vclamps-f32 %v1188_v60, 1.0 }
 0x87a   : > { %v1191_v63 = vadd.f32 1.0, %v2009_v61 }
 0x87c   : > { %v1192_v0 = vmul.f32 %v1191_v63, %v1149_v62 }
 0x87e   : > { %2010 = vmatmul.msk.f32.vlgmr.msrb.gmra.mxu3 %vm1205_vm13, %v1192_v0 }
 0x901   : > { %v1226_v2 = vpop.f32.mrf.mxu3 }
 0x902   : > { %v1227_v3 = vadd.f32 %v2122_v1, %v1226_v2 }
 0x904   : > { %v1229_v4 = vadd.f32 %v1227_v3, %v2556_v13  ;;  %v2013_v13 = vld [vmem:[%s2877_s28 + $0x30] sm:$0xff] }
 0x905   : > { %1288 = vmatpush.msrb.mxu0 %v2013_v13 }
 0x906   : > { %v1232_v5 = vsel %vm642_vm0, %v1229_v4, 0.0 }
 0x907   : > { %1233 = vadd.xlane.f32.xlu0 %v1232_v5  ;;  %1289 = vmatpush.msrb.mxu0 %v2012_v14 }
 0x909   : > { %1290 = vmatpush.msrb.mxu0 %v2011_v15 }
 0x97a   : > { %v1234_v6 = vpop.xlane.xlu0 %1233 }
 0x97b   : > { %v1235_v7 = vmul.f32 %v1234_v6, %v2425_v8 }
 0x97d   : > { %v1236_v9 = vsub.f32 %v1229_v4, %v1235_v7 }
 0x97f   : > { %v1237_v10 = vmul.f32 %v1236_v9, %v1236_v9 }
 0x981   : > { %v1238_v11 = vsel %vm642_vm0, %v1237_v10, 0.0 }
 0x982   : > { %1239 = vadd.xlane.f32.xlu0 %v1238_v11 }
 0x9f5   : > { %v1240_v16 = vpop.xlane.xlu0 %1239 }
 0x9f6   : > { %v1241_v17 = vmul.f32 %v1240_v16, %v2425_v8 }
 0x9f8   : > { %v1242_v18 = vadd.f32 1e-12, %v1241_v17 }
 0x9fa   : > { %2157 = vrsqrt.f32 %v1242_v18  ;;  %vm1249_vm15 = vweird.f32 %v1242_v18 }
 0xa00   : > { %v2158_v19 = vpop.eup %2157 }
 0xa01   : > { %v1244_v20 = vmul.f32 %v2158_v19, %v1242_v18  ;;  %vm1250_vm14 = vweird.f32 %v2158_v19 }
 0xa02   : > { %vm1251_vm1 = vmor %vm1249_vm15, %vm1250_vm14 }
 0xa03   : > { %v1245_v21 = vmul.f32 %v2158_v19, %v1244_v20 }
 0xa05   : > { %v1246_v22 = vmul.f32 0.5, %v1245_v21 }
 0xa07   : > { %v1247_v23 = vsub.f32 1.5, %v1246_v22  ;;  %v2018_v22 = vld [vmem:[%s2882_s6 + $0x28] sm:$0xff] }
 0xa09   : > { %v1248_v24 = vmul.f32 %v2158_v19, %v1247_v23 }
 0xa0b   : > { %v1252_v26 = vsel %vm1251_vm1, %v2158_v19, %v1248_v24 }
 0xa0c   : > { %v1253_v27 = vmul.f32 %v1252_v26, %v1236_v9 }
 0xa0e   : > { %v1257_v29 = vmul.f32 %v2123_v25, %v1253_v27 }
 0xa10   : > { %v2614_v30 = vadd.f32 %v2124_v28, %v1257_v29 }
 0xa12   : > { %2016 = vmatmul.msk.f32.vlgmr.msrb.gmra.mxu0 %vm642_vm0, %v2614_v30 }
 0xa8f   : > { %v1292_v33 = vpop.f32.mrf.mxu0 }
 0xa90   : > { %v2621_v34 = vadd.f32 %v2125_v31, %v1292_v33  ;;  %v2019_v33 = vld [vmem:[%s2882_s6 + $0x30] sm:$0xff] }
 0xa92   : > { %1368 = vrot.lane.b32.xlu1 %v2621_v34, %s2248_s23  ;;  %1301 = vrot.lane.b32.xlu2 %v2621_v34, %s2884_s1  ;;  %s2886_s23 = smov 64   ;;  %s2891_s1 = smov 56  }
 0xa9a   : > { %1479 = vrot.lane.b32.xlu1 %v2621_v34, %s2885_s29  ;;  %s2892_s29 = smov 48  }
 0xaec   : > { %v1302_v35 = vpop.permute.xlu2 %1301 }
 0xaed   : > { %2021 = vmatpush.xpose.msk.msra.mxu2 %vm718_vm5, %v1302_v35 }
 0xaf0   : > { %2022 = vmatmul.msk.f32.vlgmr.msra.gmra.mxu2 %vm718_vm5, %v2621_v34 }
 0xb04   : > { %v1369_v36 = vpop.permute.xlu1 %1368 }
 0xb05   : > { %2024 = vmatpush.xpose.msk.msra.mxu0 %vm718_vm5, %v1369_v36 }
 0xb0c   : > { %v1480_v55 = vpop.permute.xlu1 %1479 }
 0xb73   : > { %v1324_v37 = vpop.f32.mrf.mxu2 }
 0xb74   : > { %v1327_v38 = vmul.f32 0.35355338, %v1324_v37 }
 0xb76   : > { %v1328_v39 = vadd.f32 %v2475_v40, %v1327_v38 }
 0xb78   : > { %v1329_v41 = vsel %vm718_vm5, %v1328_v39, -inf }
 0xb79   : > { %1330 = vmax.xlane.f32.xlu0 %v1329_v41 }
 0xb8d   : > { %1340 = vrot.lane.b32.xlu0 %v2621_v34, %s2886_s23  ;;  %s629_s23 = sand.u32 1, %s2237_s22  }
 0xb95   : > { %1366 = vrot.lane.b32.xlu0 %v2621_v34, %s2887_s25 }
 0xb9d   : > { %1572 = vrot.lane.b32.xlu0 %v2621_v34, %s2888_s30  ;;  %s2893_s30 = smov 40  }
 0xba5   : > { %1570 = vrot.lane.b32.xlu0 %v2621_v34, %s2889_s3  ;;  %s1918_s3 = scalar_lea.hbm %s2842_s20, %s2385_s2 }
 0xbec   : > { %v1331_v43 = vpop.xlane.xlu0 %1330 }
 0xbed   : > { %v1332_v44 = vsub.f32 %v1328_v39, %v1331_v43 }
 0xbef   : > { %v1333_v45 = vmul.f32 1.442695, %v1332_v44 }
 0xbf1   : > { %2159 = vpow2.f32 %v1333_v45 }
 0xbf7   : > { %v2160_v46 = vpop.eup %2159 }
 0xbf8   : > { %v1335_v47 = vsel %vm718_vm5, %v2160_v46, 0.0 }
 0xbf9   : > { %1336 = vadd.xlane.f32.xlu2 %v1335_v47 }
 0xbff   : > { %v1341_v48 = vpop.permute.xlu0 %1340 }
 0xc00   : > { %1361 = vmatpush.msra.mxu1 %v1341_v48 }
 0xc02   : > { %1451 = vmatpush.msrb.mxu1 %v2018_v22 }
 0xc07   : > { %v1367_v49 = vpop.permute.xlu0 %1366 }
 0xc08   : > { %2025 = vmatmul.msk.f32.vlgmr.msra.gmra.mxu0 %vm718_vm5, %v1367_v49 }
 0xc0f   : > { %v1573_v50 = vpop.permute.xlu0 %1572 }
 0xc10   : > { %2033 = vmatpush.xpose.msk.msrb.mxu3 %vm718_vm5, %v1573_v50 }
 0xc11   : > { %1481 = vrot.lane.b32.xlu2 %v2621_v34, %s2890_s21  ;;  %s630_s21 = scalar_lea.vmem [#allocation2], %s629_s23 }
 0xc12   : > { %s1920_s5 = sshll.u32 %s630_s21, 4  ;;  %s1921_s5 = int_to_ptr.vmem [resolvable:$true] %s1920_s5 }
 0xc17   : > { %v1571_v61 = vpop.permute.xlu0 %1570 }
 0xc6c   : > { %v1337_v51 = vpop.xlane.xlu2 %1336 }
 0xc6d   : > { %2161 = vrcp.f32 %v1337_v51 }
 0xc73   : > { %v2162_v52 = vpop.eup %2161 }
 0xc74   : > { %v1339_v53 = vmul.f32 %v2162_v52, %v2160_v46  ;;  %v1482_v54 = vpop.permute.xlu2 %1481  ;;  %v2126_v46 = vld [vmem:[%s2883_s7 + $0x1] ss:$0 sm:$0xff] }
 0xc75   : > { %2029 = vmatpush.xpose.msk.msrb.mxu0 %vm718_vm5, %v1482_v54 }
 0xc76   : > { %2023 = vmatmul.msk.f32.vlgmr.msra.gmra.mxu1 %vm718_vm5, %v1339_v53 }
 0xc77   : > { %1564 = vmatpush.msra.mxu1 %v2019_v33 }
 0xc78   : > { %2030 = vmatmul.msk.f32.vlgmr.msrb.gmra.mxu0 %vm718_vm5, %v1480_v55 }
 0xc85   : > { %v1391_v56 = vpop.f32.mrf.mxu0 }
 0xc86   : > { %v1394_v57 = vmul.f32 0.35355338, %v1391_v56 }
 0xc88   : > { %v1395_v58 = vadd.f32 %v2475_v40, %v1394_v57  ;;  %v2043_v57 = vld [vmem:[%s2832_s10 + $0x38] sm:$0xff] }
 0xc8a   : > { %v1396_v59 = vsel %vm718_vm5, %v1395_v58, -inf }
 0xc8b   : > { %1397 = vmax.xlane.f32.xlu0 %v1396_v59  ;;  %v2040_v59 = vld [vmem:[%s2832_s10 + $0x20] sm:$0xff] }
 0xcf3   : > { %v1363_v32 = vpop.f32.mrf.mxu1 }
 0xcf4   : > { %2028 = vmatmul.msk.f32.vlgmr.msra.gmra.mxu3 %vm718_vm5, %v1363_v32 }
 0xcf5   : > { %v1504_v60 = vpop.f32.mrf.mxu0 }
 0xcf6   : > { %v1507_v62 = vmul.f32 0.35355338, %v1504_v60 }
 0xcf8   : > { %v1508_v63 = vadd.f32 %v2475_v40, %v1507_v62 }
 0xcfa   : > { %v1509_v0 = vsel %vm718_vm5, %v1508_v63, -inf }
 0xcfb   : > { %1510 = vmax.xlane.f32.xlu1 %v1509_v0 }
 0xcfc   : > { %2034 = vmatmul.msk.f32.vlgmr.msrb.gmra.mxu3 %vm718_vm5, %v1571_v61 }
 0xcfe   : > { %v1398_v1 = vpop.xlane.xlu0 %1397 }
 0xcff   : > { %v1399_v2 = vsub.f32 %v1395_v58, %v1398_v1  ;;  %v2041_v58 = vld [vmem:[%s2832_s10 + $0x28] sm:$0xff] }
 0xd01   : > { %v1400_v3 = vmul.f32 1.442695, %v1399_v2 }
 0xd03   : > { %2163 = vpow2.f32 %v1400_v3 }
 0xd09   : > { %v2164_v4 = vpop.eup %2163 }
 0xd0a   : > { %v1402_v5 = vsel %vm718_vm5, %v2164_v4, 0.0 }
 0xd0b   : > { %1403 = vadd.xlane.f32.xlu0 %v1402_v5 }
 0xd1f   : > { %1407 = vrot.lane.b32.xlu0 %v2621_v34, %s2891_s1  ;;  %s1922_s1 = sshll.u32 %s1918_s3, 4  ;;  %s1923_s1 = int_to_ptr.hbm [resolvable:$true] %s1922_s1 }
 0xd6e   : > { %v1511_v6 = vpop.xlane.xlu1 %1510 }
 0xd6f   : > { %v1512_v7 = vsub.f32 %v1508_v63, %v1511_v6 }
 0xd71   : > { %v1513_v9 = vmul.f32 1.442695, %v1512_v7  ;;  %v2128_v7 = vld [vmem:[%s2831_s9 + $0x1] ss:$0 sm:$0xff] }
 0xd73   : > { %2165 = vpow2.f32 %v1513_v9 }
 0xd77   : > { %v1476_v10 = vpop.f32.mrf.mxu3 }
 0xd79   : > { %v2166_v11 = vpop.eup %2165 }
 0xd7a   : > { %v1515_v12 = vsel %vm718_vm5, %v2166_v11, 0.0 }
 0xd7b   : > { %1516 = vadd.xlane.f32.xlu1 %v1515_v12 }
 0xd7e   : > { %v1404_v17 = vpop.xlane.xlu0 %1403 }
 0xd7f   : > { %v1595_v13 = vpop.f32.mrf.mxu3  ;;  %2167 = vrcp.f32 %v1404_v17  ;;  %v2054_v17 = vld [vmem:[%s2834_s12 + $0x78] sm:$0xff] }
 0xd80   : > { %v1598_v14 = vmul.f32 0.35355338, %v1595_v13  ;;  %1804 = vmatpush.msra.mxu3 %v2054_v17 }
 0xd82   : > { %v1599_v15 = vadd.f32 %v2475_v40, %v1598_v14 }
 0xd84   : > { %v1600_v16 = vsel %vm718_vm5, %v1599_v15, -inf }
 0xd85   : > { %1601 = vmax.xlane.f32.xlu2 %v1600_v16  ;;  %v2168_v18 = vpop.eup %2167 }
 0xd86   : > { %v1406_v19 = vmul.f32 %v2168_v18, %v2164_v4  ;;  %v2127_v4 = vld [vmem:[%s2830_s8 + $0x1] ss:$0 sm:$0xff] }
 0xd91   : > { %v1408_v20 = vpop.permute.xlu0 %1407 }
 0xd92   : > { %1428 = vmatpush.msrb.mxu2 %v1408_v20  ;;  %v2053_v20 = vld [vmem:[%s2834_s12 + $0x70] sm:$0xff] }
 0xd93   : > { %2026 = vmatmul.msk.f32.vlgmr.msrb.gmra.mxu2 %vm718_vm5, %v1406_v19  ;;  %1805 = vmatpush.msra.mxu3 %v2053_v20 }
 0xd9d   : > { %1520 = vrot.lane.b32.xlu2 %v2621_v34, %s2892_s29  ;;  %s1910_s29 = scalar_lea.sflag [#allocation3], %s629_s23 }
 0xdee   : > { %v1517_v21 = vpop.xlane.xlu1 %1516 }
 0xdef   : > { %2169 = vrcp.f32 %v1517_v21 }
 0xdf5   : > { %v2170_v25 = vpop.eup %2169 }
 0xdf6   : > { %v1519_v26 = vmul.f32 %v2170_v25, %v2166_v11  ;;  %v2129_v11 = vld [vmem:[%s2833_s11 + $0x1] ss:$0 sm:$0xff] }
 0xdf7   : > { %v2051_v25 = vld [vmem:[%s2834_s12 + $0x60] sm:$0xff] }
 0xdf8   : > { %v1602_v40 = vpop.xlane.xlu2 %1601 }
 0xdf9   : > { %v1603_v23 = vsub.f32 %v1599_v15, %v1602_v40  ;;  %v2052_v40 = vld [vmem:[%s2834_s12 + $0x68] sm:$0xff] }
 0xdfa   : > { %1806 = vmatpush.msra.mxu3 %v2052_v40 }
 0xdfb   : > { %v1604_v24 = vmul.f32 1.442695, %v1603_v23 }
 0xdfc   : > { %1807 = vmatpush.msra.mxu3 %v2051_v25  ;;  %v1883_v25 = vld [vmem:[%s2840_s18 + $0x18] sm:$0xff] }
 0xdfd   : > { %2171 = vpow2.f32 %v1604_v24 }
 0xe00   : > { %v1521_v27 = vpop.permute.xlu2 %1520 }
 0xe01   : > { %1541 = vmatpush.msra.mxu2 %v1521_v27  ;;  %v2050_v27 = vld [vmem:[%s2834_s12 + $0x58] sm:$0xff] }
 0xe02   : > { %2031 = vmatmul.msk.f32.vlgmr.msra.gmra.mxu2 %vm718_vm5, %v1519_v26  ;;  %1808 = vmatpush.msra.mxu3 %v2050_v27  ;;  %v1881_v27 = vld [vmem:[%s2840_s18 + $0x8] sm:$0xff] }
 0xe03   : > { %v2172_v28 = vpop.eup %2171 }
 0xe04   : > { %v1606_v29 = vsel %vm718_vm5, %v2172_v28, 0.0 }
 0xe05   : > { %1607 = vadd.xlane.f32.xlu1 %v1606_v29 }
 0xe16   : > { %v1430_v31 = vpop.f32.mrf.mxu2 }
 0xe17   : > { %2027 = vmatmul.msk.f32.vlgmr.msrb.gmra.mxu1 %vm718_vm5, %v1430_v31  ;;  %v2049_v31 = vld [vmem:[%s2834_s12 + $0x50] sm:$0xff] }
 0xe18   : > { %1727 = vmatpush.msrb.mxu1 %v2043_v57  ;;  %1809 = vmatpush.msra.mxu3 %v2049_v31 }
 0xe1e   : > { %1611 = vrot.lane.b32.xlu1 %v2621_v34, %s2893_s30  ;;  %v2020_v34 = vld [vmem:[%s2882_s6 + $0x38] sm:$0xff]  ;;  %s2197_s6 = sshra.s32 %s1923_s1, 4  ;;  %s2203_s30 = scalar_lea.hbm %s2842_s20, 2  ;;  %s2198_s6 = int_to_ptr.hbm [resolvable:$true] %s2197_s6 }
 0xe1f   : > { %1655 = vmatpush.msrb.mxu2 %v2020_v34  ;;  %s2199_s7 = scalar_lea.hbm %s2198_s6, 1  ;;  %p2204_p0 = scmp.lt.s32.totalorder %s2198_s6, %s2842_s20 }
 0xe20   : > { %p2200_p11 = scmp.ne.s32.totalorder %s2198_s6, %s2199_s7  ;;  %p2205_p1 = scmp.lt.s32.totalorder %s2203_s30, %s2199_s7 }
 0xe21   : > { %1900 = vmatpush.msra.mxu2 %v1883_v25 }
 0xe22   : > { %p2201_p12 = pnand %p2200_p11, %p2402_p5  ;;  %p2206_p2 = por %p2205_p1, %p2204_p0 }
 0xe24   : > { %p2202_p13 = pneg %p2201_p12 }
 0xe26   : > { %p2207_p3 = pnand %p2206_p2, %p2202_p13 }
 0xe78   : > { %v1608_v35 = vpop.xlane.xlu1 %1607 }
 0xe79   : > { %2173 = vrcp.f32 %v1608_v35  ;;  %v2048_v35 = vld [vmem:[%s2834_s12 + $0x48] sm:$0xff] }
 0xe7a   : > { %1810 = vmatpush.msra.mxu3 %v2048_v35 }
 0xe7f   : > { %v2174_v37 = vpop.eup %2173 }
 0xe80   : > { %v1610_v38 = vmul.f32 %v2174_v37, %v2172_v28  ;;  %v2047_v37 = vld [vmem:[%s2834_s12 + $0x40] sm:$0xff] }
 0xe81   : > { %1811 = vmatpush.msra.mxu3 %v2047_v37 }
 0xe85   : > { %v1543_v36 = vpop.f32.mrf.mxu2 }
 0xe86   : > { %2032 = vmatmul.msk.f32.vlgmr.msra.gmra.mxu1 %vm718_vm5, %v1543_v36 }
 0xe90   : > { %v1612_v39 = vpop.permute.xlu1 %1611 }
 0xe91   : > { %1632 = vmatpush.msra.mxu0 %v1612_v39 }
 0xe92   : > { %2035 = vmatmul.msk.f32.vlgmr.msra.gmra.mxu0 %vm718_vm5, %v1610_v38 }
 0xe94   : > { %v1453_v42 = vpop.f32.mrf.mxu1 }
 0xe95   : > { %v1477_v44 = vadd.f32 %v1476_v10, %v1453_v42 }
 0xf03   : > { %v1566_v43 = vpop.f32.mrf.mxu1 }
 0xf04   : > { %v1569_v45 = vadd.f32 %v1566_v43, %v1477_v44 }
 0xf0f   : > { %v1634_v41 = vpop.f32.mrf.mxu0 }
 0xf10   : > { %2036 = vmatmul.msk.f32.vlgmr.msrb.gmra.mxu2 %vm718_vm5, %v1634_v41 }
 0xf93   : > { %v1657_v47 = vpop.f32.mrf.mxu2 }
 0xf94   : > { %v1660_v48 = vadd.f32 %v1657_v47, %v1569_v45 }
 0xf96   : > { %v1666_v49 = vadd.f32 %v2126_v46, %v1660_v48 }
 0xf98   : > { %v1667_v50 = vadd.f32 %v1666_v49, %v2614_v30  ;;  %v2042_v30 = vld [vmem:[%s2832_s10 + $0x30] sm:$0xff] }
 0xf99   : > { %1728 = vmatpush.msrb.mxu1 %v2042_v30 }
 0xf9a   : > { %v1672_v51 = vsel %vm642_vm0, %v1667_v50, 0.0 }
 0xf9b   : > { %1673 = vadd.xlane.f32.xlu0 %v1672_v51  ;;  %1729 = vmatpush.msrb.mxu1 %v2041_v58 }
 0xf9d   : > { %1730 = vmatpush.msrb.mxu1 %v2040_v59 }
0x100e   : > { %v1674_v52 = vpop.xlane.xlu0 %1673 }
0x100f   : > { %v1675_v53 = vmul.f32 %v1674_v52, %v2425_v8 }
0x1011   : > { %v1676_v54 = vsub.f32 %v1667_v50, %v1675_v53 }
0x1013   : > { %v1677_v55 = vmul.f32 %v1676_v54, %v1676_v54 }
0x1015   : > { %v1678_v56 = vsel %vm642_vm0, %v1677_v55, 0.0 }
0x1016   : > { %1679 = vadd.xlane.f32.xlu2 %v1678_v56 }
0x1089   : > { %v1680_v32 = vpop.xlane.xlu2 %1679 }
0x108a   : > { %v1681_v60 = vmul.f32 %v1680_v32, %v2425_v8 }
0x108c   : > { %v1682_v61 = vadd.f32 1e-12, %v1681_v60 }
0x108e   : > { %2175 = vrsqrt.f32 %v1682_v61  ;;  %vm1689_vm3 = vweird.f32 %v1682_v61 }
0x1094   : > { %v2176_v62 = vpop.eup %2175 }
0x1095   : > { %v1684_v63 = vmul.f32 %v2176_v62, %v1682_v61  ;;  %vm1690_vm2 = vweird.f32 %v2176_v62  ;;  %v2130_v61 = vld [vmem:[%s2835_s13 + $0x1] ss:$0 sm:$0xff] }
0x1096   : > { %vm1691_vm4 = vmor %vm1689_vm3, %vm1690_vm2 }
0x1097   : > { %v1685_v0 = vmul.f32 %v2176_v62, %v1684_v63 }
0x1099   : > { %v1686_v1 = vmul.f32 0.5, %v1685_v0 }
0x109b   : > { %v1687_v2 = vsub.f32 1.5, %v1686_v1 }
0x109d   : > { %v1688_v3 = vmul.f32 %v2176_v62, %v1687_v2 }
0x109f   : > { %v1692_v5 = vsel %vm1691_vm4, %v2176_v62, %v1688_v3 }
0x10a0   : > { %v1693_v6 = vmul.f32 %v1692_v5, %v1676_v54 }
0x10a2   : > { %v1697_v9 = vmul.f32 %v2127_v4, %v1693_v6 }
0x10a4   : > { %v2712_v10 = vadd.f32 %v2128_v7, %v1697_v9  ;;  %v1854_v7 = vld [vmem:[%s2838_s16 + $0x18] sm:$0xff]  ;;  %v1853_v9 = vld [vmem:[%s2838_s16 + $0x10] sm:$0xff] }
0x10a5   : > { %1871 = vmatpush.msrb.mxu0 %v1854_v7 }
0x10a6   : > { %2045 = vmatmul.msk.f32.vlgmr.msrb.gmra.mxu1 %vm642_vm0, %v2712_v10 }
0x10a7   : > { %1872 = vmatpush.msrb.mxu0 %v1853_v9 }
0x1123   : > { %v1732_v12 = vpop.f32.mrf.mxu1 }
0x1124   : > { %v1733_v13 = vadd.f32 %v2129_v11, %v1732_v12  ;;  %v1851_v11 = vld [vmem:[%s2838_s16] sm:$0xff] }
0x1126   : > { %v1736_v14 = vmul.f32 0.70710677, %v1733_v13  ;;  %v1735_v59 = vmul.f32 0.5, %v1733_v13 }
0x1128   : > { %v1737_v15 = vmul.f32 %v1736_v14, %v1736_v14 }
0x112a   : > { %v1738_v16 = vmin.f32 %v1737_v15, 16.0 }
0x112c   : > { %v1739_v18 = vmul.f32 2.1237322e-06, %v1738_v16  ;;  %v1750_v19 = vmul.f32 3.8918573e-05, %v1738_v16 }
0x112e   : > { %v1740_v21 = vadd.f32 0.00028619796, %v1739_v18  ;;  %v1751_v22 = vadd.f32 0.001143296, %v1750_v19 }
0x1130   : > { %v1741_v23 = vmul.f32 %v1740_v21, %v1738_v16  ;;  %v1752_v24 = vmul.f32 %v1751_v22, %v1738_v16  ;;  %v2131_v21 = vld [vmem:[%s2836_s14 + $0x1] ss:$0 sm:$0xff] }
0x1132   : > { %v1753_v26 = vadd.f32 0.014752088, %v1752_v24  ;;  %v1742_v28 = vadd.f32 0.0036580483, %v1741_v23 }
0x1134   : > { %v1754_v29 = vmul.f32 %v1753_v26, %v1738_v16  ;;  %v1743_v36 = vmul.f32 %v1742_v28, %v1738_v16  ;;  %v1882_v26 = vld [vmem:[%s2840_s18 + $0x10] sm:$0xff]  ;;  %v1880_v28 = vld [vmem:[%s2840_s18] sm:$0xff] }
0x1135   : > { %1901 = vmatpush.msra.mxu2 %v1882_v26 }
0x1136   : > { %v1755_v33 = vadd.f32 0.112945676, %v1754_v29  ;;  %v1744_v34 = vadd.f32 0.05243302, %v1743_v36  ;;  %v1855_v29 = vld [vmem:[%s2839_s17] sm:$0x1] }
0x1137   : > { %1902 = vmatpush.msra.mxu2 %v1881_v27  ;;  %v1884_v36 = vld [vmem:[%s2841_s19] sm:$0x1] }
0x1138   : > { %v1756_v38 = vmul.f32 %v1755_v33, %v1738_v16  ;;  %v1745_v43 = vmul.f32 %v1744_v34, %v1738_v16 }
0x1139   : > { %1903 = vmatpush.msra.mxu2 %v1880_v28 }
0x113a   : > { %v1757_v39 = vadd.f32 0.4994258, %v1756_v38  ;;  %v1746_v44 = vadd.f32 0.18741608, %v1745_v43 }
0x113c   : > { %v1758_v41 = vmul.f32 %v1757_v39, %v1738_v16  ;;  %v1747_v46 = vmul.f32 %v1746_v44, %v1738_v16 }
0x113e   : > { %v1759_v42 = vadd.f32 1.0, %v1758_v41  ;;  %v1748_v50 = vadd.f32 1.1283791, %v1747_v46 }
0x1140   : > { %2177 = vrcp.f32 %v1759_v42  ;;  %v1771_v49 = vand.u32 2147483648, %v1759_v42  ;;  %v1769_v52 = vand.u32 2147483647, %v1759_v42  ;;  %vm1765_vm6 = vweird.f32 %v1759_v42 }
0x1141   : > { %v1749_v55 = vmul.f32 %v1748_v50, %v1736_v14 }
0x1142   : > { %v1772_v54 = vor.u32 1.1754944e-38, %v1771_v49  ;;  %vm1770_vm8 = vcmp.eq.f32.partialorder %v1769_v52, 8.507059e+37 }
0x1146   : > { %v2178_v45 = vpop.eup %2177 }
0x1147   : > { %v1761_v47 = vmul.f32 %v2178_v45, %v1759_v42  ;;  %vm1766_vm5 = vweird.f32 %v2178_v45 }
0x1148   : > { %vm1767_vm7 = vmor %vm1765_vm6, %vm1766_vm5 }
0x1149   : > { %v1762_v48 = vsub.f32 1.0, %v1761_v47 }
0x114b   : > { %v1763_v51 = vmul.f32 %v2178_v45, %v1762_v48 }
0x114d   : > { %v1764_v53 = vadd.f32 %v2178_v45, %v1763_v51 }
0x114f   : > { %v1768_v56 = vsel %vm1767_vm7, %v2178_v45, %v1764_v53 }
0x1150   : > { %v1773_v57 = vsel %vm1770_vm8, %v1772_v54, %v1768_v56 }
0x1151   : > { %v1774_v30 = vmul.f32 %v1773_v57, %v1749_v55 }
0x1153   : > { %v2046_v58 = vclamps-f32 %v1774_v30, 1.0 }
0x1155   : > { %v1777_v32 = vadd.f32 1.0, %v2046_v58 }
0x1157   : > { %v1778_v60 = vmul.f32 %v1777_v32, %v1735_v59 }
0x1159   : > { %2056 = vmatmul.msk.f32.vlgmr.msra.gmra.mxu3 %vm1205_vm13, %v1778_v60 }
0x11dc   : > { %v1813_v62 = vpop.f32.mrf.mxu3 }
0x11dd   : > { %v1814_v63 = vadd.f32 %v2130_v61, %v1813_v62 }
0x11df   : > { %v1816_v0 = vadd.f32 %v1814_v63, %v2712_v10  ;;  %v1852_v10 = vld [vmem:[%s2838_s16 + $0x8] sm:$0xff] }
0x11e0   : > { %1873 = vmatpush.msrb.mxu0 %v1852_v10 }
0x11e1   : > { %v1821_v1 = vsel %vm642_vm0, %v1816_v0, 0.0 }
0x11e2   : > { %1822 = vadd.xlane.f32.xlu1 %v1821_v1  ;;  %1874 = vmatpush.msrb.mxu0 %v1851_v11 }
0x1255   : > { %v1823_v2 = vpop.xlane.xlu1 %1822 }
0x1256   : > { %v1824_v3 = vmul.f32 %v1823_v2, %v2425_v8 }
0x1258   : > { %v1825_v4 = vsub.f32 %v1816_v0, %v1824_v3 }
0x125a   : > { %v1826_v5 = vmul.f32 %v1825_v4, %v1825_v4 }
0x125c   : > { %v1827_v6 = vsel %vm642_vm0, %v1826_v5, 0.0 }
0x125d   : > { %1828 = vadd.xlane.f32.xlu0 %v1827_v6 }
0x12d0   : > { %v1829_v12 = vpop.xlane.xlu0 %1828 }
0x12d1   : > { %v1830_v13 = vmul.f32 %v1829_v12, %v2425_v8  ;;  %v2132_v8 = vld [vmem:[%s2837_s15 + $0x1] ss:$0 sm:$0xff] }
0x12d3   : > { %v1831_v14 = vadd.f32 1e-12, %v1830_v13 }
0x12d5   : > { %2179 = vrsqrt.f32 %v1831_v14  ;;  %vm1838_vm10 = vweird.f32 %v1831_v14 }
0x12db   : > { %v2180_v15 = vpop.eup %2179 }
0x12dc   : > { %v1833_v16 = vmul.f32 %v2180_v15, %v1831_v14  ;;  %vm1839_vm9 = vweird.f32 %v2180_v15 }
0x12dd   : > { %vm1840_vm11 = vmor %vm1838_vm10, %vm1839_vm9 }
0x12de   : > { %v1834_v17 = vmul.f32 %v2180_v15, %v1833_v16 }
0x12e0   : > { %v1835_v18 = vmul.f32 0.5, %v1834_v17 }
0x12e2   : > { %v1836_v19 = vsub.f32 1.5, %v1835_v18 }
0x12e4   : > { %v1837_v20 = vmul.f32 %v2180_v15, %v1836_v19 }
0x12e6   : > { %v1841_v22 = vsel %vm1840_vm11, %v2180_v15, %v1837_v20 }
0x12e7   : > { %v1842_v40 = vmul.f32 %v1841_v22, %v1825_v4 }
0x12e9   : > { %v1846_v23 = vmul.f32 %v2131_v21, %v1842_v40 }
0x12eb   : > { %v1850_v24 = vadd.f32 %v2132_v8, %v1846_v23 }
0x12ed   : > { %2059 = vmatmul.msk.f32.vlgmr.msrb.gmra.mxu0 %vm642_vm0, %v1850_v24 }
0x136a   : > { %v1876_v31 = vpop.f32.mrf.mxu0 }
0x136b   : > { %v1877_v33 = vadd.f32 %v1876_v31, %v1855_v29 }
0x136d   : > { %2181 = vtanh.f32 %v1877_v33 }
0x1373   : > { %v2182_v35 = vpop.eup %2181 }
0x1374   : > { %2060 = vmatmul.msk.f32.vlgmr.msra.gmra.mxu2 %vm642_vm0, %v2182_v35 }
0x13f7   : > { %v1905_v37 = vpop.f32.mrf.mxu2 }
0x13f8   : > { %v1906_v38 = vadd.f32 %v1905_v37, %v1884_v36 }
0x13fa   : > { %1908 = vst [vmem:[%s630_s21] sm:$0x1] %v1906_v38 }
0x13fb   : > { %2210 = shalt.err (!%p2207_p3)
}
0x13fc   : > { %2063 = dma.vmem_to_hbm [thread:$0]  (%p2402_p5), %s1921_s5, 16, %s1923_s1, %s1910_s29  }
0x13fd PF: > { %s2894_s23 = sld [smem:[#allocation5_spill]]  ;;  %p2069_p4 = scmp.ge.s32.totalorder %s2245_s24, 2 }
0x13ff   : > { %p2066_p7 = pnand %p2069_p4, %p2406_p6 }
0x1401   : > { %p2067_p8 = pneg %p2066_p7 }
0x1403   : > { %s1934_s21 = sand.u32 1, %s2894_s23  }
0x1404   : > { %s1935_s2 = scalar_lea.sflag [#allocation3], %s1934_s21 }
0x1405   : > { %2228 = dma.done.wait (%p2067_p8), %s1935_s2, 16  }
0x1406   : > { %2230 = vsyncadd (%p2067_p8), %s1935_s2, 4294967280  ;;  %s2896_s24 = sld [smem:[#allocation7_spill]]  ;;  %s2899_s1 = smov %s2237_s22 }
0x1407   : > { %s2897_s6 = sld [smem:[#allocation6_spill]] }
0x1408   : > { %s2898_s23 = sld [smem:[#allocation8_spill]] }
0x140c   : > { %p30_p9 = scmp.ge.s32.totalorder %s2896_s24, 4  }
0x140d   : > { %s2900_s22 = smov %s2897_s6 }
0x140e   :  { %32 = sbr.rel (!%p30_p9) target bundleno = 12 (0xc), region = 150 }
0x1413   :  { %1940 = vsyncpa [#allocation3], 1 }
0x1414   :  { %1942 = vsyncpa [#allocation3 + $0x1], 1 }

</bundles_post_ra>
